<compile_context>
chip_gen: v7x
topology: tpu7x:2x2x1
jax: 0.10.0
libtpu: 0.0.40
codegen_flags: <defaults>
</compile_context>

<pallas_src>
import math
from functools import partial

import jax
import jax.numpy as jnp
from jax.experimental import pallas as pl
from jax.experimental.pallas import tpu as pltpu


def _basic_block_kernel(x_ref, rm_ref, w1_ref, w2_ref, g1_ref, b1_ref,
                        g2_ref, b2_ref, fold_ref, bcast_ref, out_ref,
                        pad_a, pad_b, *, N, H, LP, eps):
    # x_ref    : (M, LP) f32   input in padded-row order (zero rows between
    #                          images, zero padded lanes); also the residual.
    # rm_ref   : (M, 1)  f32   1.0 on real rows, 0.0 on inter-image filler rows.
    # w*_ref   : (3, LP, LP) bf16  dy-banded 3x3 weights (dx halo + lane pad in).
    # g*/b*    : (1, LP) f32   BN gamma/beta tiled on lanes (0 in padded lanes).
    # fold_ref : (LP, 128) f32 channel-fold matrix, pre-scaled by 1/(N*H*W).
    # bcast_ref: (128, LP) f32 channel -> lane broadcast matrix.
    # out_ref  : (M, LP) f32   result slab (filler rows contain junk, dropped).
    # pad_a/b  : (R, LP) bf16  vertical-halo padded conv-input slabs.
    Hp = H + 2
    R = N * Hp            # rows in the padded slabs
    M = R - 2             # conv-output rows == x/out rows

    rowmask = rm_ref[...]                                      # (M, 1)
    zrow = jnp.zeros((1, LP), jnp.bfloat16)

    # Build conv1 input: only the two outermost halo rows need explicit zeroing;
    # the inter-image halo rows are already zero rows of x_ref.
    pad_a[0:1, :] = zrow
    pad_a[R - 1:R, :] = zrow
    pad_a[1:R - 1, :] = x_ref[...].astype(jnp.bfloat16)        # single cast/copy pass

    def conv3x3(src_ref, w_ref):
        # One batched (M, LP) @ (LP, LP) MXU contraction per dy, all images at once.
        acc = jnp.dot(src_ref[0:M, :], w_ref[0],
                      preferred_element_type=jnp.float32)
        for dy in (1, 2):
            acc = acc + jnp.dot(src_ref[dy:dy + M, :], w_ref[dy],
                                preferred_element_type=jnp.float32)
        return acc                                             # (M, LP) f32

    def bn_coeffs(masked, g_ref, b_ref):
        # One-pass training-mode BN (biased batch variance).  Both moments are
        # stacked into one (2, LP) LHS -> one fold push + one broadcast push on
        # 128-aligned operands.
        s1 = jnp.sum(masked, axis=0, keepdims=True)            # (1, LP)
        s2 = jnp.sum(masked * masked, axis=0, keepdims=True)   # (1, LP)
        moments = jnp.dot(jnp.concatenate([s1, s2], axis=0), fold_ref[...],
                          preferred_element_type=jnp.float32)  # (2, 128) per-channel
        lanes = jnp.dot(moments, bcast_ref[...],
                        preferred_element_type=jnp.float32)    # (2, LP)
        mu, ex2 = lanes[0:1, :], lanes[1:2, :]
        var = jnp.maximum(ex2 - mu * mu, 0.0)
        scale = g_ref[...] * jax.lax.rsqrt(var + eps)          # (1, LP)
        bias = b_ref[...] - mu * scale
        return scale, bias

    # conv1 -> bn1 -> relu, written straight into conv2's padded input slab
    # (filler rows forced to zero so they act as the inter-image halos).
    m1 = conv3x3(pad_a, w1_ref) * rowmask
    sc1, bi1 = bn_coeffs(m1, g1_ref, b1_ref)
    pad_b[0:1, :] = zrow
    pad_b[R - 1:R, :] = zrow
    pad_b[1:R - 1, :] = (jnp.maximum(m1 * sc1 + bi1, 0.0)
                         * rowmask).astype(jnp.bfloat16)

    # conv2 -> bn2 -> +residual -> relu (residual read from x_ref only here).
    m2 = conv3x3(pad_b, w2_ref) * rowmask
    sc2, bi2 = bn_coeffs(m2, g2_ref, b2_ref)
    out_ref[...] = jnp.maximum(m2 * sc2 + bi2 + x_ref[...], 0.0)


def basic_block_pallas(x_nchw, w1_oihw, g1, b1, w2_oihw, g2, b2, eps=1e-5):
    """BasicBlock forward (stride=1, downsample=None, inplanes==planes).

    PyTorch conventions: x NCHW, conv weights OIHW, BN gamma/beta per-channel.
    BatchNorm uses training-mode batch statistics; conv math runs in bf16 with
    f32 accumulation (intentional precision choice)."""
    N, C, H, W = x_nchw.shape
    assert w1_oihw.shape == (C, C, 3, 3) and w2_oihw.shape == (C, C, 3, 3)
    Hp = H + 2
    WC = W * C
    LP = max(128, -(-WC // 128) * 128)      # lane-padded width (multiple of 128)
    CP = 128                                 # padded channel dim for BN fold
    R = N * Hp
    M = R - 2

    # ---- activations: NCHW -> NHWC -> lane-dense padded-row slab ------------
    x_rows = jnp.transpose(x_nchw, (0, 2, 3, 1)).astype(jnp.float32).reshape(N, H, WC)
    x_rows = jnp.pad(x_rows, ((0, 0), (0, 2), (0, 0)))          # 2 zero rows / image
    x2d = jnp.pad(x_rows.reshape(N * Hp, WC)[:M], ((0, 0), (0, LP - WC)))

    rowmask = ((jnp.arange(M) % Hp) < H).astype(jnp.float32).reshape(M, 1)

    # ---- weights: OIHW -> dy-banded (3, LP, LP), dx halo & lane pad absorbed -
    def banded(w_oihw):
        taps = jnp.transpose(w_oihw.astype(jnp.float32), (2, 3, 1, 0))  # (dy,dx,ci,co)
        sel = (jnp.arange(W)[:, None, None] ==
               (jnp.arange(W)[None, :, None] + jnp.arange(3)[None, None, :] - 1)
               ).astype(jnp.float32)                                    # (w', w, dx)
        band = jnp.einsum('pwd,ydio->ypiwo', sel, taps).reshape(3, WC, WC)
        return jnp.pad(band, ((0, 0), (0, LP - WC), (0, LP - WC))).astype(jnp.bfloat16)

    wb1, wb2 = banded(w1_oihw), banded(w2_oihw)

    def tile_param(p):
        return jnp.pad(jnp.tile(p.astype(jnp.float32), W), (0, LP - WC)).reshape(1, LP)

    g1t, b1t, g2t, b2t = map(tile_param, (g1, b1, g2, b2))

    # ---- BN channel fold / broadcast matrices (128-aligned) ------------------
    lane = jnp.arange(LP)
    chan = jnp.arange(CP)
    hit = (((lane[:, None] % C) == chan[None, :]) &
           (lane[:, None] < WC) & (chan[None, :] < C)).astype(jnp.float32)  # (LP, CP)
    fold = hit / float(N * H * W)
    bcast = hit.T

    vmem = pl.BlockSpec(memory_space=pltpu.MemorySpace.VMEM)
    out2d = pl.pallas_call(
        partial(_basic_block_kernel, N=N, H=H, LP=LP, eps=eps),
        out_shape=jax.ShapeDtypeStruct((M, LP), jnp.float32),
        in_specs=[vmem] * 10,
        out_specs=vmem,
        scratch_shapes=[pltpu.VMEM((R, LP), jnp.bfloat16),
                        pltpu.VMEM((R, LP), jnp.bfloat16)],
        compiler_params=pltpu.CompilerParams(vmem_limit_bytes=32 * 1024 * 1024),
    )(x2d, rowmask, wb1, wb2, g1t, b1t, g2t, b2t, fold, bcast)

    # Drop filler rows / padded lanes, back to NCHW (layout plumbing in wrapper).
    rows = (jnp.arange(N)[:, None] * Hp + jnp.arange(H)[None, :]).reshape(-1)
    out = out2d[rows][:, :WC].reshape(N, H, W, C)
    return jnp.transpose(out, (0, 3, 1, 2))


def ref_basic_block(x, w1, g1, b1, w2, g2, b2, eps=1e-5):
    """Pure-JAX reference (NCHW), mirrors the PyTorch forward."""
    def conv(x_, w_):
        return jax.lax.conv_general_dilated(
            x_, w_, window_strides=(1, 1), padding=((1, 1), (1, 1)),
            dimension_numbers=('NCHW', 'OIHW', 'NCHW'))

    def bn(x_, g_, b_):
        mu = x_.mean(axis=(0, 2, 3), keepdims=True)
        var = ((x_ - mu) ** 2).mean(axis=(0, 2, 3), keepdims=True)
        return ((x_ - mu) * jax.lax.rsqrt(var + eps)
                * g_[None, :, None, None] + b_[None, :, None, None])

    out = jnp.maximum(bn(conv(x, w1), g1, b1), 0.0)
    out = bn(conv(out, w2), g2, b2)
    return jnp.maximum(out + x, 0.0)


if __name__ == "__main__":
    key = jax.random.PRNGKey(0)
    N, C, H, W = 2, 4, 16, 16                       # inplanes = planes = 4
    k1, k2, k3 = jax.random.split(key, 3)

    x = jax.random.normal(k1, (N, C, H, W), jnp.float32)
    std = math.sqrt(2.0 / (3 * 3 * C))              # He-style init, deterministic
    w1 = jax.random.normal(k2, (C, C, 3, 3), jnp.float32) * std
    w2 = jax.random.normal(k3, (C, C, 3, 3), jnp.float32) * std
    g1 = jnp.ones((C,), jnp.float32)
    b1 = jnp.zeros((C,), jnp.float32)
    g2 = jnp.ones((C,), jnp.float32)
    b2 = jnp.zeros((C,), jnp.float32)

    out = basic_block_pallas(x, w1, g1, b1, w2, g2, b2)
    out = jax.block_until_ready(out)

    ref = ref_basic_block(x, w1, g1, b1, w2, g2, b2)
    assert out.shape == ref.shape == (N, C, H, W)
    max_err = float(jnp.max(jnp.abs(out - ref)))
    assert jnp.allclose(out, ref, atol=1e-2, rtol=1e-2), f"max abs err = {max_err}"

    print("KERNEL_OK")
</pallas_src>

<mosaic_0001>
module attributes {stable_mosaic.version = 11 : i64} {
  func.func @_basic_block_kernel(%arg0: memref<34x128xf32, #tpu.memory_space<vmem>>, %arg1: memref<34x1xf32, #tpu.memory_space<vmem>>, %arg2: memref<3x128x128xbf16, #tpu.memory_space<vmem>>, %arg3: memref<3x128x128xbf16, #tpu.memory_space<vmem>>, %arg4: memref<1x128xf32, #tpu.memory_space<vmem>>, %arg5: memref<1x128xf32, #tpu.memory_space<vmem>>, %arg6: memref<1x128xf32, #tpu.memory_space<vmem>>, %arg7: memref<1x128xf32, #tpu.memory_space<vmem>>, %arg8: memref<128x128xf32, #tpu.memory_space<vmem>>, %arg9: memref<128x128xf32, #tpu.memory_space<vmem>>, %arg10: memref<34x128xf32, #tpu.memory_space<vmem>>, %arg11: memref<36x128xbf16, #tpu.memory_space<vmem>>, %arg12: memref<36x128xbf16, #tpu.memory_space<vmem>>) attributes {dimension_semantics = [], scalar_prefetch = 0 : i64, scratch_operands = 2 : i64, tpu.core_type = #tpu.core_type<tc>} {
    %c0 = arith.constant 0 : index
    %c0_0 = arith.constant 0 : index
    %0 = vector.load %arg1[%c0, %c0_0] : memref<34x1xf32, #tpu.memory_space<vmem>>, vector<34x1xf32>
    %cst = arith.constant 0.000000e+00 : bf16
    %1 = vector.broadcast %cst : bf16 to vector<1x128xbf16>
    %c0_1 = arith.constant 0 : index
    %c0_2 = arith.constant 0 : index
    %2 = vector.load %arg11[%c0_1, %c0_2] : memref<36x128xbf16, #tpu.memory_space<vmem>>, vector<1x128xbf16>
    tpu.vector_store %arg11[%c0_1, %c0_2], %1 {strides = array<i32>} : memref<36x128xbf16, #tpu.memory_space<vmem>>, vector<1x128xbf16>,
    %c35 = arith.constant 35 : index
    %c0_3 = arith.constant 0 : index
    %3 = vector.load %arg11[%c35, %c0_3] : memref<36x128xbf16, #tpu.memory_space<vmem>>, vector<1x128xbf16>
    tpu.vector_store %arg11[%c35, %c0_3], %1 {strides = array<i32>} : memref<36x128xbf16, #tpu.memory_space<vmem>>, vector<1x128xbf16>,
    %c0_4 = arith.constant 0 : index
    %c0_5 = arith.constant 0 : index
    %4 = vector.load %arg0[%c0_4, %c0_5] : memref<34x128xf32, #tpu.memory_space<vmem>>, vector<34x128xf32>
    %5 = arith.truncf %4 : vector<34x128xf32> to vector<34x128xbf16>
    %c1 = arith.constant 1 : index
    %c0_6 = arith.constant 0 : index
    %6 = vector.load %arg11[%c1, %c0_6] : memref<36x128xbf16, #tpu.memory_space<vmem>>, vector<34x128xbf16>
    tpu.vector_store %arg11[%c1, %c0_6], %5 {strides = array<i32>} : memref<36x128xbf16, #tpu.memory_space<vmem>>, vector<34x128xbf16>,
    %c0_7 = arith.constant 0 : index
    %c0_8 = arith.constant 0 : index
    %7 = vector.load %arg11[%c0_7, %c0_8] : memref<36x128xbf16, #tpu.memory_space<vmem>>, vector<34x128xbf16>
    %c0_9 = arith.constant 0 : index
    %c0_10 = arith.constant 0 : index
    %c0_11 = arith.constant 0 : index
    %8 = vector.load %arg2[%c0_9, %c0_10, %c0_11] : memref<3x128x128xbf16, #tpu.memory_space<vmem>>, vector<1x128x128xbf16>
    %9 = vector.shape_cast %8 : vector<1x128x128xbf16> to vector<128x128xbf16>
    %cst_12 = arith.constant dense<0.000000e+00> : vector<34x128xf32>
    %10 = tpu.matmul %7, %9, %cst_12 {dimension_numbers = #tpu.dot_dimension_numbers<[1], [0], [0], [1], [0, 0, 1, 1], [], []>} : vector<34x128xbf16>, vector<128x128xbf16>, vector<34x128xf32> -> vector<34x128xf32>
    %c1_13 = arith.constant 1 : index
    %c0_14 = arith.constant 0 : index
    %11 = vector.load %arg11[%c1_13, %c0_14] : memref<36x128xbf16, #tpu.memory_space<vmem>>, vector<34x128xbf16>
    %c1_15 = arith.constant 1 : index
    %c0_16 = arith.constant 0 : index
    %c0_17 = arith.constant 0 : index
    %12 = vector.load %arg2[%c1_15, %c0_16, %c0_17] : memref<3x128x128xbf16, #tpu.memory_space<vmem>>, vector<1x128x128xbf16>
    %13 = vector.shape_cast %12 : vector<1x128x128xbf16> to vector<128x128xbf16>
    %cst_18 = arith.constant dense<0.000000e+00> : vector<34x128xf32>
    %14 = tpu.matmul %11, %13, %cst_18 {dimension_numbers = #tpu.dot_dimension_numbers<[1], [0], [0], [1], [0, 0, 1, 1], [], []>} : vector<34x128xbf16>, vector<128x128xbf16>, vector<34x128xf32> -> vector<34x128xf32>
    %15 = arith.addf %10, %14 : vector<34x128xf32>
    %c2 = arith.constant 2 : index
    %c0_19 = arith.constant 0 : index
    %16 = vector.load %arg11[%c2, %c0_19] : memref<36x128xbf16, #tpu.memory_space<vmem>>, vector<34x128xbf16>
    %c2_20 = arith.constant 2 : index
    %c0_21 = arith.constant 0 : index
    %c0_22 = arith.constant 0 : index
    %17 = vector.load %arg2[%c2_20, %c0_21, %c0_22] : memref<3x128x128xbf16, #tpu.memory_space<vmem>>, vector<1x128x128xbf16>
    %18 = vector.shape_cast %17 : vector<1x128x128xbf16> to vector<128x128xbf16>
    %cst_23 = arith.constant dense<0.000000e+00> : vector<34x128xf32>
    %19 = tpu.matmul %16, %18, %cst_23 {dimension_numbers = #tpu.dot_dimension_numbers<[1], [0], [0], [1], [0, 0, 1, 1], [], []>} : vector<34x128xbf16>, vector<128x128xbf16>, vector<34x128xf32> -> vector<34x128xf32>
    %20 = arith.addf %15, %19 : vector<34x128xf32>
    %21 = vector.broadcast %0 : vector<34x1xf32> to vector<34x128xf32>
    %22 = arith.mulf %20, %21 : vector<34x128xf32>
    %cst_24 = arith.constant dense<0.000000e+00> : vector<128xf32>
    %23 = vector.multi_reduction <add>, %22, %cst_24 [0] : vector<34x128xf32> to vector<128xf32>
    %24 = vector.shape_cast %23 : vector<128xf32> to vector<1x128xf32>
    %25 = arith.mulf %22, %22 : vector<34x128xf32>
    %cst_25 = arith.constant dense<0.000000e+00> : vector<128xf32>
    %26 = vector.multi_reduction <add>, %25, %cst_25 [0] : vector<34x128xf32> to vector<128xf32>
    %27 = vector.shape_cast %26 : vector<128xf32> to vector<1x128xf32>
    %28 = tpu.concatenate %24, %27 in 0 : vector<1x128xf32>, vector<1x128xf32> -> vector<2x128xf32>
    %c0_26 = arith.constant 0 : index
    %c0_27 = arith.constant 0 : index
    %29 = vector.load %arg8[%c0_26, %c0_27] : memref<128x128xf32, #tpu.memory_space<vmem>>, vector<128x128xf32>
    %cst_28 = arith.constant dense<0.000000e+00> : vector<2x128xf32>
    %30 = tpu.matmul %28, %29, %cst_28 {dimension_numbers = #tpu.dot_dimension_numbers<[1], [0], [0], [1], [0, 0, 1, 1], [], []>} : vector<2x128xf32>, vector<128x128xf32>, vector<2x128xf32> -> vector<2x128xf32>
    %c0_29 = arith.constant 0 : index
    %c0_30 = arith.constant 0 : index
    %31 = vector.load %arg9[%c0_29, %c0_30] : memref<128x128xf32, #tpu.memory_space<vmem>>, vector<128x128xf32>
    %cst_31 = arith.constant dense<0.000000e+00> : vector<2x128xf32>
    %32 = tpu.matmul %30, %31, %cst_31 {dimension_numbers = #tpu.dot_dimension_numbers<[1], [0], [0], [1], [0, 0, 1, 1], [], []>} : vector<2x128xf32>, vector<128x128xf32>, vector<2x128xf32> -> vector<2x128xf32>
    %33 = vector.extract_strided_slice %32 {offsets = [0, 0], sizes = [1, 128], strides = [1, 1]} : vector<2x128xf32> to vector<1x128xf32>
    %34 = vector.extract_strided_slice %32 {offsets = [1, 0], sizes = [1, 128], strides = [1, 1]} : vector<2x128xf32> to vector<1x128xf32>
    %35 = arith.mulf %33, %33 : vector<1x128xf32>
    %36 = arith.subf %34, %35 : vector<1x128xf32>
    %cst_32 = arith.constant 0.000000e+00 : f32
    %37 = vector.broadcast %cst_32 : f32 to vector<1x128xf32>
    %38 = arith.maximumf %36, %37 : vector<1x128xf32>
    %c0_33 = arith.constant 0 : index
    %c0_34 = arith.constant 0 : index
    %39 = vector.load %arg4[%c0_33, %c0_34] : memref<1x128xf32, #tpu.memory_space<vmem>>, vector<1x128xf32>
    %cst_35 = arith.constant 9.99999974E-6 : f32
    %40 = vector.broadcast %cst_35 : f32 to vector<1x128xf32>
    %41 = arith.addf %38, %40 : vector<1x128xf32>
    %42 = math.rsqrt %41 : vector<1x128xf32>
    %43 = arith.mulf %39, %42 : vector<1x128xf32>
    %c0_36 = arith.constant 0 : index
    %c0_37 = arith.constant 0 : index
    %44 = vector.load %arg5[%c0_36, %c0_37] : memref<1x128xf32, #tpu.memory_space<vmem>>, vector<1x128xf32>
    %45 = arith.mulf %33, %43 : vector<1x128xf32>
    %46 = arith.subf %44, %45 : vector<1x128xf32>
    %c0_38 = arith.constant 0 : index
    %c0_39 = arith.constant 0 : index
    %47 = vector.load %arg12[%c0_38, %c0_39] : memref<36x128xbf16, #tpu.memory_space<vmem>>, vector<1x128xbf16>
    tpu.vector_store %arg12[%c0_38, %c0_39], %1 {strides = array<i32>} : memref<36x128xbf16, #tpu.memory_space<vmem>>, vector<1x128xbf16>,
    %c35_40 = arith.constant 35 : index
    %c0_41 = arith.constant 0 : index
    %48 = vector.load %arg12[%c35_40, %c0_41] : memref<36x128xbf16, #tpu.memory_space<vmem>>, vector<1x128xbf16>
    tpu.vector_store %arg12[%c35_40, %c0_41], %1 {strides = array<i32>} : memref<36x128xbf16, #tpu.memory_space<vmem>>, vector<1x128xbf16>,
    %49 = vector.broadcast %43 : vector<1x128xf32> to vector<34x128xf32>
    %50 = arith.mulf %22, %49 : vector<34x128xf32>
    %51 = vector.broadcast %46 : vector<1x128xf32> to vector<34x128xf32>
    %52 = arith.addf %50, %51 : vector<34x128xf32>
    %cst_42 = arith.constant 0.000000e+00 : f32
    %53 = vector.broadcast %cst_42 : f32 to vector<34x128xf32>
    %54 = arith.maximumf %52, %53 : vector<34x128xf32>
    %55 = vector.broadcast %0 : vector<34x1xf32> to vector<34x128xf32>
    %56 = arith.mulf %54, %55 : vector<34x128xf32>
    %57 = arith.truncf %56 : vector<34x128xf32> to vector<34x128xbf16>
    %c1_43 = arith.constant 1 : index
    %c0_44 = arith.constant 0 : index
    %58 = vector.load %arg12[%c1_43, %c0_44] : memref<36x128xbf16, #tpu.memory_space<vmem>>, vector<34x128xbf16>
    tpu.vector_store %arg12[%c1_43, %c0_44], %57 {strides = array<i32>} : memref<36x128xbf16, #tpu.memory_space<vmem>>, vector<34x128xbf16>,
    %c0_45 = arith.constant 0 : index
    %c0_46 = arith.constant 0 : index
    %59 = vector.load %arg12[%c0_45, %c0_46] : memref<36x128xbf16, #tpu.memory_space<vmem>>, vector<34x128xbf16>
    %c0_47 = arith.constant 0 : index
    %c0_48 = arith.constant 0 : index
    %c0_49 = arith.constant 0 : index
    %60 = vector.load %arg3[%c0_47, %c0_48, %c0_49] : memref<3x128x128xbf16, #tpu.memory_space<vmem>>, vector<1x128x128xbf16>
    %61 = vector.shape_cast %60 : vector<1x128x128xbf16> to vector<128x128xbf16>
    %cst_50 = arith.constant dense<0.000000e+00> : vector<34x128xf32>
    %62 = tpu.matmul %59, %61, %cst_50 {dimension_numbers = #tpu.dot_dimension_numbers<[1], [0], [0], [1], [0, 0, 1, 1], [], []>} : vector<34x128xbf16>, vector<128x128xbf16>, vector<34x128xf32> -> vector<34x128xf32>
    %c1_51 = arith.constant 1 : index
    %c0_52 = arith.constant 0 : index
    %63 = vector.load %arg12[%c1_51, %c0_52] : memref<36x128xbf16, #tpu.memory_space<vmem>>, vector<34x128xbf16>
    %c1_53 = arith.constant 1 : index
    %c0_54 = arith.constant 0 : index
    %c0_55 = arith.constant 0 : index
    %64 = vector.load %arg3[%c1_53, %c0_54, %c0_55] : memref<3x128x128xbf16, #tpu.memory_space<vmem>>, vector<1x128x128xbf16>
    %65 = vector.shape_cast %64 : vector<1x128x128xbf16> to vector<128x128xbf16>
    %cst_56 = arith.constant dense<0.000000e+00> : vector<34x128xf32>
    %66 = tpu.matmul %63, %65, %cst_56 {dimension_numbers = #tpu.dot_dimension_numbers<[1], [0], [0], [1], [0, 0, 1, 1], [], []>} : vector<34x128xbf16>, vector<128x128xbf16>, vector<34x128xf32> -> vector<34x128xf32>
    %67 = arith.addf %62, %66 : vector<34x128xf32>
    %c2_57 = arith.constant 2 : index
    %c0_58 = arith.constant 0 : index
    %68 = vector.load %arg12[%c2_57, %c0_58] : memref<36x128xbf16, #tpu.memory_space<vmem>>, vector<34x128xbf16>
    %c2_59 = arith.constant 2 : index
    %c0_60 = arith.constant 0 : index
    %c0_61 = arith.constant 0 : index
    %69 = vector.load %arg3[%c2_59, %c0_60, %c0_61] : memref<3x128x128xbf16, #tpu.memory_space<vmem>>, vector<1x128x128xbf16>
    %70 = vector.shape_cast %69 : vector<1x128x128xbf16> to vector<128x128xbf16>
    %cst_62 = arith.constant dense<0.000000e+00> : vector<34x128xf32>
    %71 = tpu.matmul %68, %70, %cst_62 {dimension_numbers = #tpu.dot_dimension_numbers<[1], [0], [0], [1], [0, 0, 1, 1], [], []>} : vector<34x128xbf16>, vector<128x128xbf16>, vector<34x128xf32> -> vector<34x128xf32>
    %72 = arith.addf %67, %71 : vector<34x128xf32>
    %73 = vector.broadcast %0 : vector<34x1xf32> to vector<34x128xf32>
    %74 = arith.mulf %72, %73 : vector<34x128xf32>
    %cst_63 = arith.constant dense<0.000000e+00> : vector<128xf32>
    %75 = vector.multi_reduction <add>, %74, %cst_63 [0] : vector<34x128xf32> to vector<128xf32>
    %76 = vector.shape_cast %75 : vector<128xf32> to vector<1x128xf32>
    %77 = arith.mulf %74, %74 : vector<34x128xf32>
    %cst_64 = arith.constant dense<0.000000e+00> : vector<128xf32>
    %78 = vector.multi_reduction <add>, %77, %cst_64 [0] : vector<34x128xf32> to vector<128xf32>
    %79 = vector.shape_cast %78 : vector<128xf32> to vector<1x128xf32>
    %80 = tpu.concatenate %76, %79 in 0 : vector<1x128xf32>, vector<1x128xf32> -> vector<2x128xf32>
    %c0_65 = arith.constant 0 : index
    %c0_66 = arith.constant 0 : index
    %81 = vector.load %arg8[%c0_65, %c0_66] : memref<128x128xf32, #tpu.memory_space<vmem>>, vector<128x128xf32>
    %cst_67 = arith.constant dense<0.000000e+00> : vector<2x128xf32>
    %82 = tpu.matmul %80, %81, %cst_67 {dimension_numbers = #tpu.dot_dimension_numbers<[1], [0], [0], [1], [0, 0, 1, 1], [], []>} : vector<2x128xf32>, vector<128x128xf32>, vector<2x128xf32> -> vector<2x128xf32>
    %c0_68 = arith.constant 0 : index
    %c0_69 = arith.constant 0 : index
    %83 = vector.load %arg9[%c0_68, %c0_69] : memref<128x128xf32, #tpu.memory_space<vmem>>, vector<128x128xf32>
    %cst_70 = arith.constant dense<0.000000e+00> : vector<2x128xf32>
    %84 = tpu.matmul %82, %83, %cst_70 {dimension_numbers = #tpu.dot_dimension_numbers<[1], [0], [0], [1], [0, 0, 1, 1], [], []>} : vector<2x128xf32>, vector<128x128xf32>, vector<2x128xf32> -> vector<2x128xf32>
    %85 = vector.extract_strided_slice %84 {offsets = [0, 0], sizes = [1, 128], strides = [1, 1]} : vector<2x128xf32> to vector<1x128xf32>
    %86 = vector.extract_strided_slice %84 {offsets = [1, 0], sizes = [1, 128], strides = [1, 1]} : vector<2x128xf32> to vector<1x128xf32>
    %87 = arith.mulf %85, %85 : vector<1x128xf32>
    %88 = arith.subf %86, %87 : vector<1x128xf32>
    %cst_71 = arith.constant 0.000000e+00 : f32
    %89 = vector.broadcast %cst_71 : f32 to vector<1x128xf32>
    %90 = arith.maximumf %88, %89 : vector<1x128xf32>
    %c0_72 = arith.constant 0 : index
    %c0_73 = arith.constant 0 : index
    %91 = vector.load %arg6[%c0_72, %c0_73] : memref<1x128xf32, #tpu.memory_space<vmem>>, vector<1x128xf32>
    %cst_74 = arith.constant 9.99999974E-6 : f32
    %92 = vector.broadcast %cst_74 : f32 to vector<1x128xf32>
    %93 = arith.addf %90, %92 : vector<1x128xf32>
    %94 = math.rsqrt %93 : vector<1x128xf32>
    %95 = arith.mulf %91, %94 : vector<1x128xf32>
    %c0_75 = arith.constant 0 : index
    %c0_76 = arith.constant 0 : index
    %96 = vector.load %arg7[%c0_75, %c0_76] : memref<1x128xf32, #tpu.memory_space<vmem>>, vector<1x128xf32>
    %97 = arith.mulf %85, %95 : vector<1x128xf32>
    %98 = arith.subf %96, %97 : vector<1x128xf32>
    %99 = vector.broadcast %95 : vector<1x128xf32> to vector<34x128xf32>
    %100 = arith.mulf %74, %99 : vector<34x128xf32>
    %101 = vector.broadcast %98 : vector<1x128xf32> to vector<34x128xf32>
    %102 = arith.addf %100, %101 : vector<34x128xf32>
    %c0_77 = arith.constant 0 : index
    %c0_78 = arith.constant 0 : index
    %103 = vector.load %arg0[%c0_77, %c0_78] : memref<34x128xf32, #tpu.memory_space<vmem>>, vector<34x128xf32>
    %104 = arith.addf %102, %103 : vector<34x128xf32>
    %cst_79 = arith.constant 0.000000e+00 : f32
    %105 = vector.broadcast %cst_79 : f32 to vector<34x128xf32>
    %106 = arith.maximumf %104, %105 : vector<34x128xf32>
    %c0_80 = arith.constant 0 : index
    %c0_81 = arith.constant 0 : index
    %107 = vector.load %arg10[%c0_80, %c0_81] : memref<34x128xf32, #tpu.memory_space<vmem>>, vector<34x128xf32>
    tpu.vector_store %arg10[%c0_80, %c0_81], %106 {strides = array<i32>} : memref<34x128xf32, #tpu.memory_space<vmem>>, vector<34x128xf32>,
    return
  }
}

</mosaic_0001>

<bundles_post_ra>
// kernel: tpu_custom_call.1
= control target key start
LH: loop header
LB: loop body
LE: loop exit
PB: predicated region body
PF: predicated region fallthrough
CT: control target
= control target key end

     0   :  { %15 = vsyncpa [#allocation5], 0  ;;  %s3153_s0 = inlined_call_operand.vmem [shape: f32[34,128], index: 0, kind: input, shape index: {}]   ;;  %s3154_s1 = inlined_call_operand.vmem [shape: f32[34,1], index: 1, kind: input, shape index: {}]   ;;  %s3155_s2 = inlined_call_operand.hbm [shape: bf16[3,128,128], index: 2, kind: input, shape index: {}]   ;;  %s3156_s3 = inlined_call_operand.hbm [shape: bf16[3,128,128], index: 3, kind: input, shape index: {}]   ;;  %s3157_s4 = inlined_call_operand.vmem [shape: f32[1,128], index: 4, kind: input, shape index: {}]   ;;  %s3158_s5 = inlined_call_operand.vmem [shape: f32[1,128], index: 5, kind: input, shape index: {}]   ;;  %s3159_s6 = inlined_call_operand.vmem [shape: f32[1,128], index: 6, kind: input, shape index: {}]   ;;  %s3160_s7 = inlined_call_operand.vmem [shape: f32[1,128], index: 7, kind: input, shape index: {}]   ;;  %s3161_s8 = inlined_call_operand.hbm [shape: f32[128,128], index: 8, kind: input, shape index: {}]   ;;  %s3162_s9 = inlined_call_operand.hbm [shape: f32[128,128], index: 9, kind: input, shape index: {}]   ;;  %s3163_s10 = inlined_call_operand.hbm [shape: f32[34,128], index: 10, kind: output, shape index: {}]  }
   0x1   :  { %16 = vsyncpa [#allocation8], 0 }
   0x2   :  { %17 = vsyncpa [#allocation11], 0 }
   0x3   :  { %18 = vsyncpa [#allocation6], 0  ;;  %s2586_s13 = smov [#allocation7]   ;;  %s2587_s15 = smov [#allocation4]  }
   0x4   :  { %s40_s14 = sshll.u32 %s2586_s13, 4  ;;  %s28_s16 = sshll.u32 %s2587_s15, 4  ;;  %s41_s14 = int_to_ptr.vmem [resolvable:$true] %s40_s14  ;;  %s2655_s16 = int_to_ptr.vmem [resolvable:$true] %s28_s16 }
   0x5   :  { %s2468_s19 = scalar_lea.hbm %s3156_s3, 3072 }
   0x6   :  { %p2469_p0 = scmp.ne.s32.totalorder %s3156_s3, %s2468_s19  ;;  %p2472_p1 = scmp.lt.u32.totalorder %s2468_s19, %s3156_s3 }
   0x8   :  { %p2474_p2 = pnand %p2472_p1, %p2469_p0 }
   0xa   :  { %2477 = shalt.err (!%p2474_p2)
}
   0xb   :  { %s2478_s24 = scalar_lea.vmem %s41_s14, 3072  ;;  %p2483_p4 = scmp.lt.s32.totalorder %s41_s14, %s41_s14 }
   0xc   :  { %p2479_p3 = scmp.ne.s32.totalorder %s41_s14, %s2478_s24  ;;  %p2484_p5 = scmp.lt.s32.totalorder %s2478_s24, %s2478_s24 }
   0xe   :  { %p2485_p6 = por %p2484_p5, %p2483_p4 }
  0x10   :  { %p2486_p7 = pnand %p2485_p6, %p2479_p3 }
  0x12   :  { %2489 = shalt.err (!%p2486_p7)
}
  0x13   :  { %s2588_s25 = smov 64   ;;  %s2589_s26 = smov 4  }
  0x14   :  { %46 = dma.hbm_to_vmem [thread:$0]  %s3156_s3, 3072, %s41_s14, [#allocation8], %s2588_s25, %s2588_s25, %s2589_s26  }
  0x15   :  { %s2490_s11 = scalar_lea.hbm %s3155_s2, 3072 }
  0x16   :  { %p2491_p8 = scmp.ne.s32.totalorder %s3155_s2, %s2490_s11  ;;  %p2494_p9 = scmp.lt.u32.totalorder %s2490_s11, %s3155_s2 }
  0x18   :  { %p2496_p10 = pnand %p2494_p9, %p2491_p8 }
  0x1a   :  { %2499 = shalt.err (!%p2496_p10)
}
  0x1b   :  { %s2500_s18 = scalar_lea.vmem %s2655_s16, 3072  ;;  %p2505_p12 = scmp.lt.s32.totalorder %s2655_s16, %s2655_s16 }
  0x1c   :  { %p2501_p11 = scmp.ne.s32.totalorder %s2655_s16, %s2500_s18  ;;  %p2506_p13 = scmp.lt.s32.totalorder %s2500_s18, %s2500_s18 }
  0x1e   :  { %p2507_p0 = por %p2506_p13, %p2505_p12 }
  0x20   :  { %p2508_p1 = pnand %p2507_p0, %p2501_p11 }
  0x22   :  { %2511 = shalt.err (!%p2508_p1)
}
  0x23   :  { %34 = dma.hbm_to_vmem [thread:$0]  %s3155_s2, 3072, %s2655_s16, [#allocation5], %s2588_s25, %s2588_s25, %s2589_s26  }
  0x24   :  { %s2590_s19 = smov [#allocation9]   ;;  %s2512_s23 = scalar_lea.hbm %s3161_s8, 2048 }
  0x25   :  { %s60_s20 = sshll.u32 %s2590_s19, 4  ;;  %p2513_p2 = scmp.ne.s32.totalorder %s3161_s8, %s2512_s23  ;;  %s61_s20 = int_to_ptr.vmem [resolvable:$true] %s60_s20 }
  0x26   :  { %p2516_p3 = scmp.lt.u32.totalorder %s2512_s23, %s3161_s8 }
  0x28   :  { %p2518_p4 = pnand %p2516_p3, %p2513_p2 }
  0x2a   :  { %2521 = shalt.err (!%p2518_p4)
}
  0x2b   :  { %s2522_s30 = scalar_lea.vmem %s61_s20, 2048  ;;  %p2527_p6 = scmp.lt.s32.totalorder %s61_s20, %s61_s20 }
  0x2c   :  { %p2523_p5 = scmp.ne.s32.totalorder %s61_s20, %s2522_s30  ;;  %p2528_p7 = scmp.lt.s32.totalorder %s2522_s30, %s2522_s30 }
  0x2e   :  { %p2529_p8 = por %p2528_p7, %p2527_p6 }
  0x30   :  { %p2530_p9 = pnand %p2529_p8, %p2523_p5 }
  0x32   :  { %2533 = shalt.err (!%p2530_p9)
}
  0x33   :  { %s2591_s2 = smov 128   ;;  %s2592_s16 = smov 8  }
  0x34   :  { %66 = dma.hbm_to_vmem [thread:$0]  %s3161_s8, 2048, %s61_s20, [#allocation8], %s2591_s2, %s2591_s2, %s2592_s16  }
  0x35   :  { %s2593_s11 = smov [#allocation10]   ;;  %s2534_s17 = scalar_lea.hbm %s3162_s9, 2048 }
  0x36   :  { %s72_s12 = sshll.u32 %s2593_s11, 4  ;;  %p2535_p10 = scmp.ne.s32.totalorder %s3162_s9, %s2534_s17  ;;  %s73_s12 = int_to_ptr.vmem [resolvable:$true] %s72_s12 }
  0x37   :  { %p2538_p11 = scmp.lt.u32.totalorder %s2534_s17, %s3162_s9 }
  0x39   :  { %p2540_p12 = pnand %p2538_p11, %p2535_p10 }
  0x3b   :  { %2543 = shalt.err (!%p2540_p12)
}
  0x3c   :  { %s2544_s21 = scalar_lea.vmem %s73_s12, 2048  ;;  %p2549_p0 = scmp.lt.s32.totalorder %s73_s12, %s73_s12 }
  0x3d   :  { %p2545_p13 = scmp.ne.s32.totalorder %s73_s12, %s2544_s21  ;;  %p2550_p1 = scmp.lt.s32.totalorder %s2544_s21, %s2544_s21 }
  0x3f   :  { %p2551_p2 = por %p2550_p1, %p2549_p0 }
  0x41   :  { %p2552_p3 = pnand %p2551_p2, %p2545_p13 }
  0x43   :  { %2555 = shalt.err (!%p2552_p3)
}
  0x44   :  { %78 = dma.hbm_to_vmem [thread:$0]  %s3162_s9, 2048, %s73_s12, [#allocation11], %s2591_s2, %s2591_s2, %s2592_s16  }
  0x45   :  { %2578 = dma.done.wait [#allocation5], 3072  }
  0x46   :  { %2579 = vsyncadd [#allocation5], 4294964224 }
  0x47   :  { %2580 = dma.done.wait [#allocation8], 5120  }
  0x48   :  { %2581 = vsyncadd [#allocation8], 4294962176 }
  0x49   :  { %2582 = dma.done.wait [#allocation11], 2048  }
  0x4a   :  { %2583 = vsyncadd [#allocation11], 4294965248  ;;  %v2594_v0 = vmov 0.0   ;;  %vm2595_vm0 = vmmov 0   ;;  %v2596_v1 = vmov 0   ;;  %v2406_v2 = vld [vmem:[#allocation4 + $0x40] sm:$0xff]  }
  0x4b   :  { %1938 = vmatprep.subr.bf16.mxu0 %v2594_v0  ;;  %1954 = vmatprep.mubr.msk.bf16.mxu0 %vm2595_vm0, %v2594_v0  ;;  %vm98_vm1 = vsmask.f32 256  ;;  %v2407_v3 = vld [vmem:[#allocation4 + $0x48] sm:$0xff]   ;;  %vm97_vm2 = vcmask 1040384   ;;  %vm130_vm4 = vsmask.f32 4368 }
  0x4c   :  { %2054 = vmatprep.mubr.msk.f32.mxu1 %vm2595_vm0, %v2594_v0  ;;  %2404 = vset.pattern.permute.xlu0 %v2596_v1  ;;  %vm2724_vm3 = vmand %vm97_vm2, %vm98_vm1  ;;  %v2408_v5 = vld [vmem:[#allocation4 + $0x50] sm:$0xff]   ;;  %vm181_vm5 = vsmask.f32 7938  ;;  %v100_v6 = vld [vmem:[#allocation2] sm:$0x1]  ;;  %vm180_vm7 = vcmask 1043456  }
  0x4d   :  { %2405 = vset.pattern.permute.xlu1 %v2596_v1  ;;  %1939 = vmatpush3.bf16.msra.mxu0 %v2406_v2  ;;  %v109_v7 = vld [vmem:[%s3153_s0] sm:$0xff]  ;;  %v110_v8 = vld [vmem:[%s3153_s0 + $0x8] sm:$0xff]  ;;  %vm104_vm6 = vsmask.f32 7942  ;;  %v101_v9 = vsel %vm2724_vm3, 0, %v100_v6  ;;  %v111_v10 = vld [vmem:[%s3153_s0 + $0x10] sm:$0xff] }
  0x4e   :  { %1940 = vmatprep.subr.bf16.mxu0 %v2594_v0  ;;  %v112_v11 = vld [vmem:[%s3153_s0 + $0x18] sm:$0xff]  ;;  %v1794_v12 = vpack.c.bf16 %v109_v7, %v109_v7  ;;  %v1795_v13 = vpack.c.bf16 %v110_v8, %v110_v8  ;;  %v2409_v14 = vld [vmem:[#allocation4 + $0x58] sm:$0xff]   ;;  %102 = vst [vmem:[#allocation2] sm:$0x1] %v101_v9  ;;  %v1796_v15 = vpack.c.bf16 %v111_v10, %v111_v10  ;;  %vm103_vm8 = vcmask 1041409   ;;  %v2410_v21 = vld [vmem:[#allocation4 + $0x60] sm:$0xff]  }
  0x4f   :  { %v1797_v16 = vpack.c.bf16 %v112_v11, %v112_v11  ;;  %vm2745_vm9 = vmand %vm103_vm8, %vm104_vm6  ;;  %v106_v37 = vld [vmem:[#allocation2 + $0x10] sm:$0x2]  ;;  %v113_v42 = vld [vmem:[%s3153_s0 + $0x20] sm:$0x3]  ;;  %vm189_vm12 = vcmask 1041408   ;;  %s2599_s12 = smov [#allocation12]  }
  0x50   :  { %v133_v17 = vshrl.u32 %v1794_v12, 16  ;;  %v136_v18 = vshll.u32 %v1794_v12, 16  ;;  %v141_v19 = vshrl.u32 %v1795_v13, 16  ;;  %v144_v20 = vshll.u32 %v1795_v13, 16  ;;  %vm2751_vm10 = vmor %vm98_vm1, %vm130_vm4  ;;  %v2411_v43 = vld [vmem:[#allocation4 + $0x68] sm:$0xff]   ;;  %v2412_v54 = vld [vmem:[#allocation4 + $0x70] sm:$0xff]  }
  0x51   :  { %1941 = vmatpush3.bf16.msra.mxu0 %v2407_v3  ;;  %v150_v22 = vshrl.u32 %v1796_v15, 16  ;;  %v153_v23 = vshll.u32 %v1796_v15, 16  ;;  %v159_v24 = vshrl.u32 %v1797_v16, 16  ;;  %v162_v25 = vshll.u32 %v1797_v16, 16  ;;  %vm2758_vm11 = vmand %vm180_vm7, %vm181_vm5  ;;  %v2413_v57 = vld [vmem:[#allocation4 + $0x78] sm:$0xff]   ;;  %v2416_v10 = vld [vmem:[#allocation4] sm:$0xff]  }
  0x52   :  { %1942 = vmatprep.subr.bf16.mxu0 %v2594_v0  ;;  %v135_v26 = vrot.slane %v133_v17, 7  ;;  %v143_v27 = vrot.slane %v141_v19, 7  ;;  %v107_v41 = vsel %vm2745_vm9, 0, %v106_v37  ;;  %v1798_v46 = vpack.c.bf16 %v113_v42, %v113_v42  ;;  %v92_v9 = vld [vmem:[%s3154_s1] sm:$0xff]  ;;  %v94_v13 = vld [vmem:[%s3154_s1 + $0x10] sm:$0xff]  ;;  %v93_v16 = vld [vmem:[%s3154_s1 + $0x8] sm:$0xff] }
  0x53   :  { %v152_v30 = vrot.slane %v150_v22, 7  ;;  %v161_v31 = vrot.slane %v159_v24, 7  ;;  %108 = vst [vmem:[#allocation2 + $0x10] sm:$0x2] %v107_v41  ;;  %vm190_vm13 = vsmask.f32 1280  ;;  %629 = vperm.xlu0 %2404, %v92_v9   ;;  %639 = vperm.xlu1 %2405, %v94_v13  }
  0x54   :  { %v138_v32 = vor.u32 %v136_v18, %v135_v26  ;;  %v139_v33 = vrot.slane %v135_v26, 4  ;;  %v146_v34 = vor.u32 %v144_v20, %v143_v27  ;;  %v148_v35 = vrot.slane %v143_v27, 4  ;;  %vm2778_vm14 = vmand %vm189_vm12, %vm190_vm13  ;;  %v2417_v20 = vld [vmem:[#allocation4 + $0x8] sm:$0xff]   ;;  %v2425_v41 = vld [vmem:[#allocation4 + $0x80] sm:$0xff]   ;;  %s1712_s13 = sshll.u32 %s2599_s12, 4  ;;  %s1713_s13 = int_to_ptr.vmem [resolvable:$true] %s1712_s13 }
  0x55   :  { %1943 = vmatpush3.bf16.msra.mxu0 %v2408_v5  ;;  %v155_v38 = vor.u32 %v153_v23, %v152_v30  ;;  %v157_v39 = vrot.slane %v152_v30, 4  ;;  %v164_v40 = vor.u32 %v162_v25, %v161_v31  ;;  %v183_v45 = vld [vmem:[#allocation2] sm:$0xf]  ;;  %v168_v50 = vshrl.u32 %v1798_v46, 16  ;;  %v2426_v42 = vld [vmem:[#allocation4 + $0x88] sm:$0xff]   ;;  %v2439_v4 = vld [vmem:[#allocation7 + $0x60] sm:$0xff]   ;;  %p2561_p5 = scmp.lt.s32.totalorder %s1713_s13, %s1713_s13 }
  0x56   :  { %1944 = vmatprep.subr.bf16.mxu0 %v2594_v0  ;;  %v147_v44 = vsel %vm2751_vm10, %v139_v33, %v146_v34  ;;  %v184_v49 = vsel %vm2758_vm11, %v138_v32, %v183_v45  ;;  %v171_v51 = vshll.u32 %v1798_v46, 16  ;;  %v166_v52 = vrot.slane %v161_v31, 4  ;;  %v96_v25 = vld [vmem:[%s3154_s1 + $0x20] sm:$0x3]  ;;  %v2418_v32 = vld [vmem:[#allocation4 + $0x10] sm:$0xff]   ;;  %v2429_v46 = vld [vmem:[#allocation4 + $0xa0] sm:$0xff]  }
  0x57   :  { %v156_v47 = vsel %vm2751_vm10, %v148_v35, %v155_v38  ;;  %v165_v48 = vsel %vm2751_vm10, %v157_v39, %v164_v40  ;;  %186 = vst [vmem:[#allocation2 + $0x4] sm:$0xf] %v147_v44  ;;  %185 = vst [vmem:[#allocation2] sm:$0xf] %v184_v49  ;;  %v170_v53 = vrot.slane %v168_v50, 7  ;;  %vm509_vm1 = vcmask 1046528   ;;  %634 = vperm.xlu0 %2404, %v93_v16  }
  0x58   :  { %187 = vst [vmem:[#allocation2 + $0x8] sm:$0xf] %v156_v47  ;;  %188 = vst [vmem:[#allocation2 + $0xc] sm:$0xf] %v165_v48  ;;  %vm247_vm15 = vsmask.f32 7424 }
  0x59   :  { %1945 = vmatpush3.bf16.msra.mxu0 %v2409_v14  ;;  %v173_v55 = vor.u32 %v171_v51, %v170_v53  ;;  %v2419_v34 = vld [vmem:[#allocation4 + $0x18] sm:$0xff]   ;;  %v2421_v35 = vld [vmem:[#allocation4 + $0x20] sm:$0xff]   ;;  %v2422_v38 = vld [vmem:[#allocation4 + $0x28] sm:$0xff]   ;;  %v2597_v53 = vmov 0.0|0.0  }
  0x5a   :  { %1946 = vmatprep.subr.bf16.mxu0 %v2594_v0  ;;  %v192_v58 = vld [vmem:[#allocation2 + $0x10] sm:$0x3]  ;;  %v2423_v39 = vld [vmem:[#allocation4 + $0x30] sm:$0xff]   ;;  %v2424_v40 = vld [vmem:[#allocation4 + $0x38] sm:$0xff]   ;;  %2246 = vmatprep.subr.bf16.mxu1 %v2597_v53 }
  0x5b   :  { %v174_v60 = vsel %vm2751_vm10, %v166_v52, %v173_v55  ;;  %649 = vperm.xlu0 %2404, %v96_v25   ;;  %v2428_v44 = vld [vmem:[#allocation4 + $0x98] sm:$0xff]   ;;  %v2430_v47 = vld [vmem:[#allocation4 + $0xa8] sm:$0xff]   ;;  %v2432_v48 = vld [vmem:[#allocation4 + $0xb0] sm:$0xff]  }
  0x5c   :  { %v193_v62 = vsel %vm2778_vm14, %v174_v60, %v192_v58  ;;  %v2433_v49 = vld [vmem:[#allocation4 + $0xb8] sm:$0xff]   ;;  %v687_v50 = vld [vmem:[#allocation9] sm:$0xff]  ;;  %v688_v51 = vld [vmem:[#allocation9 + $0x8] sm:$0xff] }
  0x5d   :  { %1947 = vmatpush3.bf16.msra.mxu0 %v2410_v21  ;;  %194 = vst [vmem:[#allocation2 + $0x10] sm:$0x3] %v193_v62  ;;  %v95_v21 = vld [vmem:[%s3154_s1 + $0x18] sm:$0xff]  ;;  %v2247_v52 = vpack.c.bf16 %v688_v51, %v687_v50  ;;  %v690_v55 = vld [vmem:[#allocation9 + $0x18] sm:$0xff]  ;;  %v691_v58 = vld [vmem:[#allocation9 + $0x20] sm:$0xff] }
  0x5e   :  { %1948 = vmatprep.subr.bf16.mxu0 %v2594_v0  ;;  %v196_v59 = vld [vmem:[#allocation2 + $0x4] sm:$0xf]  ;;  %v195_v61 = vld [vmem:[#allocation2] sm:$0xf]  ;;  %644 = vperm.xlu1 %2405, %v95_v21   ;;  %v700_v9 = vld [vmem:[#allocation9 + $0x68] sm:$0xff] }
  0x5f   :  { %v2787_v63 = vcombine.low %v195_v61, %v196_v59  ;;  %v2789_v1 = vld [vmem:[#allocation2 + $0x8] sm:$0xff]   ;;  %v488_v8 = vld [vmem:[#allocation2] sm:$0xe]  ;;  %2248 = vmatpush3.bf16.msra.mxu1 %v2247_v52  ;;  %v693_v61 = vld [vmem:[#allocation9 + $0x30] sm:$0xff] }
  0x60   :  { %v256_v5 = vshll.u32 %v2789_v1, 16  ;;  %v1751_v11 = vcombine.low %v488_v8, %v196_v59  ;;  %v511_v12 = vrot.slane %v2789_v1, 1  ;;  %v260_v15 = vshrl.u32 %v2789_v1, 16  ;;  %2249 = vmatprep.subr.bf16.mxu1 %v2597_v53  ;;  %v692_v59 = vld [vmem:[#allocation9 + $0x28] sm:$0xff]  ;;  %v694_v62 = vld [vmem:[#allocation9 + $0x38] sm:$0xff]  ;;  %v699_v8 = vld [vmem:[#allocation9 + $0x60] sm:$0xff] }
  0x61   :  { %1949 = vmatpush3.bf16.msra.mxu0 %v2411_v43  ;;  %v249_v2 = vshrl.u32 %v2787_v63, 16  ;;  %v251_v3 = vshll.u32 %v2787_v63, 16  ;;  %v2427_v43 = vld [vmem:[#allocation4 + $0x90] sm:$0xff]   ;;  %v2253_v60 = vpack.c.bf16 %v692_v59, %v691_v58  ;;  %v2440_v28 = vld [vmem:[#allocation7 + $0x68] sm:$0xff]  }
  0x62   :  { %1950 = vmatprep.subr.bf16.mxu0 %v2594_v0  ;;  %v258_v7 = vrot.slane %v256_v5, 1  ;;  %v510_v18 = vrot.slane %v1751_v11, 1  ;;  %v697_v5 = vld [vmem:[#allocation9 + $0x50] sm:$0xff] }
  0x63   :  { %v253_v6 = vrot.slane %v251_v3, 1  ;;  %v701_v11 = vld [vmem:[#allocation9 + $0x70] sm:$0xff] }
  0x64   :  { %v2806_v17 = vld [vmem:[#allocation2 + $0x10] ss:$0 sps:$4 sm:$0x33]   ;;  %v2814_v23 = vsel %vm509_vm1, %v510_v18, %v511_v12  ;;  %v262_v26 = vor.u32 %v260_v15, %v258_v7 }
  0x65   :  { %1951 = vmatpush3.bf16.msra.mxu0 %v2412_v54  ;;  %v254_v14 = vor.u32 %v253_v6, %v249_v2  ;;  %v264_v22 = vshll.u32 %v2806_v17, 16  ;;  %v513_v24 = vrot.slane %v2806_v17, 1  ;;  %v268_v30 = vshrl.u32 %v2806_v17, 16  ;;  %v2431_v45 = vld [vmem:[#allocation2 + $0x10] ss:$0 sps:$4 sm:$0x11]  }
  0x66   :  { %1952 = vmatprep.subr.bf16.mxu0 %v2594_v0  ;;  %v689_v54 = vld [vmem:[#allocation9 + $0x10] sm:$0xff]  ;;  %v696_v2 = vld [vmem:[#allocation9 + $0x48] sm:$0xff]  ;;  %v698_v6 = vld [vmem:[#allocation9 + $0x58] sm:$0xff] }
  0x67   :  { %v259_v19 = vsel %vm247_vm15, %v254_v14, %v258_v7  ;;  %v266_v27 = vrot.slane %v264_v22, 1  ;;  %v514_v31 = vsel %vm509_vm1, %v511_v12, %v513_v24  ;;  %v2262_v7 = vpack.c.bf16 %v698_v6, %v697_v5  ;;  %v702_v12 = vld [vmem:[#allocation9 + $0x78] sm:$0xff] }
  0x68   :  { %v2268_v13 = vpack.c.bf16 %v702_v12, %v701_v11 }
  0x69   :  { %1953 = vmatpush3.bf16.msra.mxu0 %v2413_v57  ;;  %v267_v33 = vsel %vm247_vm15, %v262_v26, %v266_v27  ;;  %v270_v37 = vor.u32 %v268_v30, %v266_v27  ;;  %v2250_v57 = vpack.c.bf16 %v690_v55, %v689_v54 }
  0x6a   :  { %1966 = vmatprep.subr.bf16.mxu0 %v2594_v0 }
  0x6b   :  { %2251 = vmatpush3.bf16.msra.mxu1 %v2250_v57 }
  0x6c   :  { %1955 = vmatmul.mubr.bf16.vlgmr.msra.gmra.mrb[0].mxu0 %v259_v19  ;;  %2252 = vmatprep.subr.bf16.mxu1 %v2597_v53 }
  0x6d   :  { %1967 = vmatpush3.bf16.msra.mxu0 %v2416_v10  ;;  %1958 = vmatprep.mubr.msk.bf16.mxu0 %vm2595_vm0, %v2594_v0  ;;  %v2265_v10 = vpack.c.bf16 %v700_v9, %v699_v8  ;;  %v775_v9 = vld [vmem:[#allocation10 + $0x10] sm:$0xff] }
  0x6e   :  { %1968 = vmatprep.subr.bf16.mxu0 %v2594_v0 }
  0x6f   :  { %2254 = vmatpush3.bf16.msra.mxu1 %v2253_v60 }
  0x70   :  { %2255 = vmatprep.subr.bf16.mxu1 %v2597_v53 }
  0x71   :  { %1969 = vmatpush3.bf16.msra.mxu0 %v2417_v20 }
  0x72   :  { %1970 = vmatprep.subr.bf16.mxu0 %v2594_v0 }
  0x74   :  { %1959 = vmatmul.mubr.bf16.gmra.mrb[4].mxu0 %v267_v33 }
  0x75   :  { %1971 = vmatpush3.bf16.msra.mxu0 %v2418_v32  ;;  %1962 = vmatprep.mubr.msk.bf16.mxu0 %vm2595_vm0, %v2594_v0 }
  0x76   :  { %1972 = vmatprep.subr.bf16.mxu0 %v2594_v0 }
  0x79   :  { %1973 = vmatpush3.bf16.msra.mxu0 %v2419_v34 }
  0x7a   :  { %1974 = vmatprep.subr.bf16.mxu0 %v2594_v0 }
  0x7c   :  { %1963 = vmatmul.mubr.bf16.gmra.mrb[8].mxu0 %v270_v37 }
  0x7d   :  { %1975 = vmatpush3.bf16.msra.mxu0 %v2421_v35  ;;  %1982 = vmatprep.mubr.msk.bf16.mxu0 %vm2595_vm0, %v2594_v0 }
  0x7e   :  { %1976 = vmatprep.subr.bf16.mxu0 %v2594_v0 }
  0x81   :  { %1977 = vmatpush3.bf16.msra.mxu0 %v2422_v38 }
  0x82   :  { %1978 = vmatprep.subr.bf16.mxu0 %v2594_v0 }
  0x85   :  { %1979 = vmatpush3.bf16.msra.mxu0 %v2423_v39 }
  0x86   :  { %1980 = vmatprep.subr.bf16.mxu0 %v2594_v0 }
  0x89   :  { %1981 = vmatpush3.bf16.msra.mxu0 %v2424_v40 }
  0x8a   :  { %1994 = vmatprep.subr.bf16.mxu0 %v2594_v0 }
  0x8c   :  { %1983 = vmatmul.mubr.bf16.vlgmr.msra.gmra.mrb[0].mxu0 %v2787_v63  ;;  %v2256_v63 = vpack.c.bf16 %v694_v62, %v693_v61 }
  0x8d   :  { %1995 = vmatpush3.bf16.msra.mxu0 %v2425_v41  ;;  %1986 = vmatprep.mubr.msk.bf16.mxu0 %vm2595_vm0, %v2594_v0 }
  0x8e   :  { %1996 = vmatprep.subr.bf16.mxu0 %v2594_v0  ;;  %2257 = vmatpush3.bf16.msra.mxu1 %v2256_v63 }
  0x8f   :  { %2258 = vmatprep.subr.bf16.mxu1 %v2597_v53 }
  0x91   :  { %1997 = vmatpush3.bf16.msra.mxu0 %v2426_v42 }
  0x92   :  { %1998 = vmatprep.subr.bf16.mxu0 %v2594_v0 }
  0x94   :  { %1987 = vmatmul.mubr.bf16.gmra.mrb[4].mxu0 %v2789_v1  ;;  %v695_v1 = vld [vmem:[#allocation9 + $0x40] sm:$0xff] }
  0x95   :  { %1999 = vmatpush3.bf16.msra.mxu0 %v2427_v43  ;;  %1990 = vmatprep.mubr.msk.bf16.mxu0 %vm2595_vm0, %v2594_v0  ;;  %v2259_v3 = vpack.c.bf16 %v696_v2, %v695_v1  ;;  %v773_v2 = vld [vmem:[#allocation10] sm:$0xff] }
  0x96   :  { %2000 = vmatprep.subr.bf16.mxu0 %v2594_v0 }
  0x97   :  { %2260 = vmatpush3.bf16.msra.mxu1 %v2259_v3 }
  0x98   :  { %2261 = vmatprep.subr.bf16.mxu1 %v2597_v53 }
  0x99   :  { %2001 = vmatpush3.bf16.msra.mxu0 %v2428_v44 }
  0x9a   :  { %2002 = vmatprep.subr.bf16.mxu0 %v2594_v0 }
  0x9b   :  { %2263 = vmatpush3.bf16.msra.mxu1 %v2262_v7 }
  0x9c   :  { %1991 = vmatmul.mubr.bf16.gmra.mrb[8].mxu0 %v2431_v45  ;;  %2264 = vmatprep.subr.bf16.mxu1 %v2597_v53 }
  0x9d   :  { %2003 = vmatpush3.bf16.msra.mxu0 %v2429_v46  ;;  %2010 = vmatprep.mubr.msk.bf16.mxu0 %vm2595_vm0, %v2594_v0 }
  0x9e   :  { %2004 = vmatprep.subr.bf16.mxu0 %v2594_v0 }
  0x9f   :  { %2266 = vmatpush3.bf16.msra.mxu1 %v2265_v10 }
  0xa0   :  { %2267 = vmatprep.subr.bf16.mxu1 %v2597_v53 }
  0xa1   :  { %2005 = vmatpush3.bf16.msra.mxu0 %v2430_v47 }
  0xa2   :  { %2006 = vmatprep.subr.bf16.mxu0 %v2594_v0 }
  0xa3   :  { %2269 = vmatpush3.bf16.msra.mxu1 %v2268_v13 }
  0xa4   :  { %2270 = vmatprep.subr.bf16.mxu1 %v2597_v53 }
  0xa5   :  { %2007 = vmatpush3.bf16.msra.mxu0 %v2432_v48 }
  0xa6   :  { %2008 = vmatprep.subr.bf16.mxu0 %v2594_v0 }
  0xa9   :  { %2009 = vmatpush3.bf16.msra.mxu0 %v2433_v49 }
  0xaa   :  { %2294 = vmatprep.subr.bf16.mxu0 %v2597_v53 }
  0xac   :  { %2011 = vmatmul.mubr.bf16.vlgmr.msra.gmra.mrb[0].mxu0 %v2814_v23 }
  0xad   :  { %2014 = vmatprep.mubr.msk.bf16.mxu0 %vm2595_vm0, %v2594_v0  ;;  %2296 = vmatpush3.bf16.msra.mxu0 %v2247_v52 }
  0xae   :  { %2297 = vmatprep.subr.bf16.mxu0 %v2597_v53 }
  0xb1   :  { %2299 = vmatpush3.bf16.msra.mxu0 %v2250_v57 }
  0xb2   :  { %2300 = vmatprep.subr.bf16.mxu0 %v2597_v53 }
  0xb4   :  { %2015 = vmatmul.mubr.bf16.gmra.mrb[4].mxu0 %v514_v31 }
  0xb5   :  { %2018 = vmatprep.mubr.msk.bf16.mxu0 %vm2595_vm0, %v2594_v0  ;;  %2302 = vmatpush3.bf16.msra.mxu0 %v2253_v60 }
  0xb6   :  { %2303 = vmatprep.subr.bf16.mxu0 %v2597_v53 }
  0xb9   :  { %2305 = vmatpush3.bf16.msra.mxu0 %v2256_v63 }
  0xba   :  { %2306 = vmatprep.subr.bf16.mxu0 %v2597_v53 }
  0xbc   :  { %2019 = vmatmul.mubr.bf16.gmra.mrb[8].mxu0 %v513_v24 }
  0xbd   :  { %2208 = vmatprep.mubr.msk.f32.mxu0 %vm2595_vm0, %v2594_v0  ;;  %2308 = vmatpush3.bf16.msra.mxu0 %v2259_v3  ;;  %v774_v3 = vld [vmem:[#allocation10 + $0x8] sm:$0xff] }
  0xbe   :  { %2309 = vmatprep.subr.bf16.mxu0 %v2597_v53  ;;  %v2923_v8 = vpack.c.bf16 %v774_v3, %v773_v2  ;;  %v2598_v2 = vmov 1966171168  }
  0xbf   :  { %v870_v3 = vunpack.c.l.s4 %v2598_v2 }
  0xc1   :  { %2311 = vmatpush3.bf16.msra.mxu0 %v2262_v7 }
  0xc2   :  { %2312 = vmatprep.subr.bf16.mxu0 %v2597_v53 }
  0xc5   :  { %2314 = vmatpush3.bf16.msra.mxu0 %v2265_v10  ;;  %v776_v10 = vld [vmem:[#allocation10 + $0x18] sm:$0xff] }
  0xc6   :  { %2315 = vmatprep.subr.bf16.mxu0 %v2597_v53  ;;  %v2927_v12 = vpack.c.bf16 %v776_v10, %v775_v9 }
  0xc9   :  { %2317 = vmatpush3.bf16.msra.mxu0 %v2268_v13  ;;  %v777_v13 = vld [vmem:[#allocation10 + $0x20] sm:$0xff] }
  0xca   :  { %2318 = vmatprep.subr.bf16.mxu0 %v2597_v53 }
  0xd2   :  { %v2881_v14 = vpop.permute.xlu0 %629  ;;  %v2885_v20 = vpop.permute.xlu1 %639 }
  0xd6   :  { %v2883_v18 = vpop.permute.xlu0 %634 }
  0xda   :  { %v2910_v39 = vpop.permute.xlu0 %649 }
  0xdd   :  { %v2896_v26 = vpop.permute.xlu1 %644 }
 0x17f   :  { %v600_v15 = vpop.f32.mrb[0].mxu0 }
 0x180   :  { %v2012_v16 = vpop.f32.mrb[1].mxu0  ;;  %v2891_v22 = vmul.f32 %v2881_v14, %v600_v15  ;;  %v778_v15 = vld [vmem:[#allocation10 + $0x28] sm:$0xff] }
 0x181   :  { %v603_v17 = vpop.f32.mrb[2].mxu0  ;;  %v2933_v16 = vpack.c.bf16 %v778_v15, %v777_v13  ;;  %v865_v15 = vld [vmem:[%s3157_s4] sm:$0x1] }
 0x182   :  { %v2013_v19 = vpop.f32.mrb[3].mxu0  ;;  %v2888_v21 = vmul.f32 %v2883_v18, %v603_v17  ;;  %v669_v32 = vmul.f32 %v2891_v22, %v2891_v22  ;;  %v779_v17 = vld [vmem:[#allocation10 + $0x30] sm:$0xff] }
 0x183   :  { %v780_v19 = vld [vmem:[#allocation10 + $0x38] sm:$0xff] }
 0x184   :  { %v670_v27 = vmul.f32 %v2888_v21, %v2888_v21  ;;  %v657_v33 = vadd.f32 %v2888_v21, %v2891_v22 }
 0x186   :  { %v674_v38 = vadd.f32 %v670_v27, %v669_v32  ;;  %v782_v27 = vld [vmem:[#allocation10 + $0x48] sm:$0xff]  ;;  %v784_v32 = vld [vmem:[#allocation10 + $0x58] sm:$0xff] }
 0x187   :  { %v608_v23 = vpop.f32.mrb[4].mxu0 }
 0x188   :  { %v2894_v24 = vmul.f32 %v2885_v20, %v608_v23  ;;  %v2016_v25 = vpop.f32.mrb[5].mxu0  ;;  %v2937_v23 = vpack.c.bf16 %v780_v19, %v779_v17 }
 0x189   :  { %v611_v30 = vpop.f32.mrb[6].mxu0  ;;  %v781_v25 = vld [vmem:[#allocation10 + $0x40] sm:$0xff] }
 0x18a   :  { %v2017_v31 = vpop.f32.mrb[7].mxu0  ;;  %v671_v34 = vmul.f32 %v2894_v24, %v2894_v24  ;;  %v2907_v35 = vmul.f32 %v2896_v26, %v611_v30  ;;  %v658_v37 = vadd.f32 %v657_v33, %v2894_v24  ;;  %v2941_v30 = vpack.c.bf16 %v782_v27, %v781_v25  ;;  %v886_v27 = vld [vmem:[%s3158_s5] sm:$0x1] }
 0x18b   :  { %v783_v31 = vld [vmem:[#allocation10 + $0x50] sm:$0xff] }
 0x18c   :  { %v675_v40 = vadd.f32 %v674_v38, %v671_v34  ;;  %v672_v41 = vmul.f32 %v2907_v35, %v2907_v35  ;;  %v659_v45 = vadd.f32 %v658_v37, %v2907_v35  ;;  %v2945_v33 = vpack.c.bf16 %v784_v32, %v783_v31  ;;  %v785_v34 = vld [vmem:[#allocation10 + $0x60] sm:$0xff]  ;;  %v786_v37 = vld [vmem:[#allocation10 + $0x68] sm:$0xff] }
 0x18d   :  { %v2949_v38 = vpack.c.bf16 %v786_v37, %v785_v34 }
 0x18e   :  { %v676_v50 = vadd.f32 %v675_v40, %v672_v41  ;;  %v787_v40 = vld [vmem:[#allocation10 + $0x70] sm:$0xff]  ;;  %v788_v41 = vld [vmem:[#allocation10 + $0x78] sm:$0xff] }
 0x18f   :  { %v616_v42 = vpop.f32.mrb[8].mxu0 }
 0x190   :  { %v2915_v43 = vmul.f32 %v2910_v39, %v616_v42  ;;  %v2020_v44 = vpop.f32.mrb[9].mxu0  ;;  %v2953_v42 = vpack.c.bf16 %v788_v41, %v787_v40 }
 0x191   :  { %v619_v46 = vpop.f32.mrb[10].mxu0 }
 0x192   :  { %v661_v47 = vsel %vm189_vm12, %v2915_v43, 0.0  ;;  %v673_v48 = vmul.f32 %v2915_v43, %v2915_v43  ;;  %v2021_v49 = vpop.f32.mrb[11].mxu0  ;;  %v889_v46 = vld [vmem:[#allocation3] sm:$0x1] }
 0x193   :  { %v662_v51 = vadd.f32 %v661_v47, %v659_v45  ;;  %v892_v47 = vld [vmem:[#allocation3 + $0x10] sm:$0x2] }
 0x194   :  { %v677_v52 = vsel %vm189_vm12, %v673_v48, 0.0  ;;  %v890_v48 = vsel %vm2724_vm3, 0, %v889_v46  ;;  %v893_v49 = vsel %vm2745_vm9, 0, %v892_v47 }
 0x195   :  { %v663_v54 = vrot.slane %v662_v51, 4  ;;  %v678_v55 = vadd.f32 %v677_v52, %v676_v50  ;;  %891 = vst [vmem:[#allocation3] sm:$0x1] %v890_v48  ;;  %894 = vst [vmem:[#allocation3 + $0x10] sm:$0x2] %v893_v49  ;;  %v2435_v50 = vld [vmem:[#allocation7 + $0x40] sm:$0xff]  }
 0x196   :  { %v2437_v52 = vld [vmem:[#allocation7 + $0x50] sm:$0xff]  }
 0x197   :  { %v664_v57 = vadd.f32 %v663_v54, %v662_v51  ;;  %v679_v58 = vrot.slane %v678_v55, 4  ;;  %v2436_v51 = vld [vmem:[#allocation7 + $0x48] sm:$0xff]   ;;  %v2438_v54 = vld [vmem:[#allocation7 + $0x58] sm:$0xff]  }
 0x199   :  { %v665_v59 = vrot.slane %v664_v57, 2  ;;  %v680_v60 = vadd.f32 %v679_v58, %v678_v55  ;;  %v2441_v55 = vld [vmem:[#allocation7 + $0x70] sm:$0xff]  }
 0x19b   :  { %v666_v61 = vadd.f32 %v665_v59, %v664_v57  ;;  %v681_v62 = vrot.slane %v680_v60, 2  ;;  %v2442_v57 = vld [vmem:[#allocation7 + $0x78] sm:$0xff]  }
 0x19d   :  { %v667_v63 = vrot.slane %v666_v61, 1  ;;  %v682_v1 = vadd.f32 %v681_v62, %v680_v60 }
 0x19f   :  { %v683_v5 = vrot.slane %v682_v1, 1  ;;  %v668_v6 = vadd.f32 %v667_v63, %v666_v61 }
 0x1a1   :  { %v684_v7 = vadd.f32 %v683_v5, %v682_v1  ;;  %v872_v5 = vlaneseq }
 0x1a3   :  { %v686_v11 = vsel %vm97_vm2, %v668_v6, %v684_v7  ;;  %v871_v6 = vunpack.c.0.s8 %v870_v3  ;;  %v873_v7 = vshrl.u32 %v872_v5, 7 }
 0x1a4   :  { %2055 = vmatmul.mubr.f32.vlgmr.msra.gmra.mrb[0].mxu1 %v686_v11 }
 0x1a5   :  { %2272 = vmatpush3.bf16.msra.mxu1 %v2923_v8  ;;  %2089 = vmatprep.mubr.msk.f32.mxu1 %vm2595_vm0, %v2594_v0  ;;  %v2972_v9 = vsub.s32 %v871_v6, %v873_v7  ;;  %v2979_v19 = vsub.s32 0, %v873_v7 }
 0x1a6   :  { %2273 = vmatprep.subr.bf16.mxu1 %v2597_v53 }
 0x1a9   :  { %2275 = vmatpush3.bf16.msra.mxu1 %v2927_v12 }
 0x1aa   :  { %2276 = vmatprep.subr.bf16.mxu1 %v2597_v53 }
 0x1ad   :  { %2278 = vmatpush3.bf16.msra.mxu1 %v2933_v16 }
 0x1ae   :  { %2279 = vmatprep.subr.bf16.mxu1 %v2597_v53 }
 0x1b1   :  { %2281 = vmatpush3.bf16.msra.mxu1 %v2937_v23 }
 0x1b2   :  { %2282 = vmatprep.subr.bf16.mxu1 %v2597_v53 }
 0x1b5   :  { %2284 = vmatpush3.bf16.msra.mxu1 %v2941_v30 }
 0x1b6   :  { %2285 = vmatprep.subr.bf16.mxu1 %v2597_v53 }
 0x1b9   :  { %2287 = vmatpush3.bf16.msra.mxu1 %v2945_v33 }
 0x1ba   :  { %2288 = vmatprep.subr.bf16.mxu1 %v2597_v53 }
 0x1bd   :  { %2290 = vmatpush3.bf16.msra.mxu1 %v2949_v38 }
 0x1be   :  { %2291 = vmatprep.subr.bf16.mxu1 %v2597_v53 }
 0x1c1   :  { %2293 = vmatpush3.bf16.msra.mxu1 %v2953_v42 }
 0x1c2   :  { %2092 = vmatprep.subr.bf16.mxu1 %v2594_v0 }
 0x277   :  { %v769_v44 = vpop.f32.mrb[0].mxu1 }
 0x278   :  { %v2056_v45 = vpop.f32.mrb[1].mxu1  ;;  %2090 = vmatmul.mubr.f32.vlgmr.msra.gmra.mrb[2].mxu1 %v769_v44 }
 0x279   :  { %2108 = vmatprep.mubr.msk.bf16.mxu1 %vm2595_vm0, %v2594_v0  ;;  %2093 = vmatpush3.bf16.msra.mxu1 %v2435_v50 }
 0x27a   :  { %2094 = vmatprep.subr.bf16.mxu1 %v2594_v0 }
 0x27d   :  { %2095 = vmatpush3.bf16.msra.mxu1 %v2436_v51 }
 0x27e   :  { %2096 = vmatprep.subr.bf16.mxu1 %v2594_v0 }
 0x281   :  { %2097 = vmatpush3.bf16.msra.mxu1 %v2437_v52 }
 0x282   :  { %2098 = vmatprep.subr.bf16.mxu1 %v2594_v0 }
 0x285   :  { %2099 = vmatpush3.bf16.msra.mxu1 %v2438_v54 }
 0x286   :  { %2100 = vmatprep.subr.bf16.mxu1 %v2594_v0 }
 0x289   :  { %2101 = vmatpush3.bf16.msra.mxu1 %v2439_v4 }
 0x28a   :  { %2102 = vmatprep.subr.bf16.mxu1 %v2594_v0 }
 0x28d   :  { %2103 = vmatpush3.bf16.msra.mxu1 %v2440_v28 }
 0x28e   :  { %2104 = vmatprep.subr.bf16.mxu1 %v2594_v0 }
 0x291   :  { %2105 = vmatpush3.bf16.msra.mxu1 %v2441_v55 }
 0x292   :  { %2106 = vmatprep.subr.bf16.mxu1 %v2594_v0 }
 0x295   :  { %2107 = vmatpush3.bf16.msra.mxu1 %v2442_v57 }
 0x296   :  { %2120 = vmatprep.subr.bf16.mxu1 %v2594_v0 }
 0x34b   :  { %v855_v58 = vpop.f32.mrb[2].mxu1 }
 0x34c   :  { %v859_v59 = vmul.f32 %v855_v58, %v855_v58  ;;  %v2091_v60 = vpop.f32.mrb[3].mxu1 }
 0x34e   :  { %v861_v61 = vrot.slane %v859_v59, 7 }
 0x350   :  { %v863_v62 = vsub.f32 %v855_v58, %v861_v61 }
 0x352   :  { %v864_v63 = vmax.f32 %v863_v62, 0.0 }
 0x354   :  { %v866_v1 = vadd.f32 1e-05, %v864_v63 }
 0x356   :  { %2464 = vrsqrt.f32 %v866_v1 }
 0x360   :  { %v2465_v10 = vpop.eup %2464 }
 0x361   :  { %v875_v11 = vrot.slane %v2465_v10, %v2972_v9 }
 0x363   :  { %v876_v13 = vcombine.high %v875_v11, %v875_v11 }
 0x365   :  { %v883_v17 = vrot.slane %v876_v13, %v2972_v9 }
 0x367   :  { %v885_v25 = vmul.f32 %v883_v17, %v865_v15 }
 0x369   :  { %v887_v31 = vmul.f32 %v885_v25, %v855_v58  ;;  %v899_v32 = vrot.slane %v885_v25, %v2979_v19  ;;  %v991_v25 = vld [vmem:[#allocation3] sm:$0xf] }
 0x36b   :  { %v888_v34 = vsub.f32 %v886_v27, %v887_v31  ;;  %v901_v37 = vmul.f32 %v899_v32, %v2891_v22  ;;  %v902_v40 = vmul.f32 %v899_v32, %v2888_v21  ;;  %v903_v41 = vmul.f32 %v899_v32, %v2894_v24 }
 0x36c   :  { %v904_v44 = vmul.f32 %v899_v32, %v2907_v35  ;;  %v905_v46 = vmul.f32 %v899_v32, %v2915_v43 }
 0x36d   :  { %v910_v45 = vrot.slane %v888_v34, %v2979_v19 }
 0x36f   :  { %v912_v47 = vadd.f32 %v910_v45, %v901_v37  ;;  %v913_v48 = vadd.f32 %v910_v45, %v902_v40  ;;  %v914_v49 = vadd.f32 %v910_v45, %v903_v41  ;;  %v915_v50 = vadd.f32 %v910_v45, %v904_v44 }
 0x370   :  { %v916_v51 = vadd.f32 %v910_v45, %v905_v46 }
 0x371   :  { %v917_v52 = vmax.f32 %v912_v47, 0.0  ;;  %v918_v54 = vmax.f32 %v913_v48, 0.0  ;;  %v919_v4 = vmax.f32 %v914_v49, 0.0  ;;  %v920_v28 = vmax.f32 %v915_v50, 0.0 }
 0x372   :  { %v921_v22 = vmax.f32 %v916_v51, 0.0 }
 0x373   :  { %v922_v21 = vmul.f32 %v917_v52, %v2881_v14  ;;  %v923_v24 = vmul.f32 %v918_v54, %v2883_v18  ;;  %v924_v35 = vmul.f32 %v919_v4, %v2885_v20  ;;  %v925_v55 = vmul.f32 %v920_v28, %v2896_v26  ;;  %v997_v52 = vld [vmem:[#allocation3 + $0x10] sm:$0x3] }
 0x374   :  { %v926_v43 = vmul.f32 %v921_v22, %v2910_v39 }
 0x375   :  { %v1799_v57 = vpack.c.bf16 %v922_v21, %v922_v21  ;;  %v1800_v58 = vpack.c.bf16 %v923_v24, %v923_v24  ;;  %v1801_v59 = vpack.c.bf16 %v924_v35, %v924_v35  ;;  %v1802_v60 = vpack.c.bf16 %v925_v55, %v925_v55 }
 0x376   :  { %v1803_v61 = vpack.c.bf16 %v926_v43, %v926_v43 }
 0x377   :  { %v944_v62 = vshrl.u32 %v1799_v57, 16  ;;  %v952_v63 = vshrl.u32 %v1800_v58, 16  ;;  %v947_v1 = vshll.u32 %v1799_v57, 16  ;;  %v961_v2 = vshrl.u32 %v1801_v59, 16 }
 0x378   :  { %v970_v3 = vshrl.u32 %v1802_v60, 16  ;;  %v955_v7 = vshll.u32 %v1800_v58, 16  ;;  %v979_v10 = vshrl.u32 %v1803_v61, 16  ;;  %v964_v13 = vshll.u32 %v1801_v59, 16 }
 0x379   :  { %v946_v5 = vrot.slane %v944_v62, 7  ;;  %v954_v6 = vrot.slane %v952_v63, 7  ;;  %v963_v11 = vrot.slane %v961_v2, 7  ;;  %v973_v17 = vshll.u32 %v1802_v60, 16  ;;  %v2445_v63 = vld [vmem:[#allocation7] sm:$0xff]  }
 0x37a   :  { %v972_v15 = vrot.slane %v970_v3, 7  ;;  %v982_v44 = vshll.u32 %v1803_v61, 16  ;;  %v981_v47 = vrot.slane %v979_v10, 7 }
 0x37b   :  { %v949_v27 = vor.u32 %v947_v1, %v946_v5  ;;  %v950_v31 = vrot.slane %v946_v5, 4  ;;  %v957_v32 = vor.u32 %v955_v7, %v954_v6  ;;  %v959_v34 = vrot.slane %v954_v6, 4  ;;  %v2446_v6 = vld [vmem:[#allocation7 + $0x8] sm:$0xff]  }
 0x37c   :  { %v966_v37 = vor.u32 %v964_v13, %v963_v11  ;;  %v968_v40 = vrot.slane %v963_v11, 4  ;;  %v975_v41 = vor.u32 %v973_v17, %v972_v15  ;;  %v977_v46 = vrot.slane %v972_v15, 4  ;;  %v2448_v13 = vld [vmem:[#allocation7 + $0x10] sm:$0xff]   ;;  %v2449_v17 = vld [vmem:[#allocation7 + $0x18] sm:$0xff]  }
 0x37d   :  { %v958_v45 = vsel %vm2751_vm10, %v950_v31, %v957_v32  ;;  %v992_v48 = vsel %vm2758_vm11, %v949_v27, %v991_v25  ;;  %v984_v51 = vor.u32 %v982_v44, %v981_v47  ;;  %v2450_v27 = vld [vmem:[#allocation7 + $0x20] sm:$0xff]   ;;  %v2451_v32 = vld [vmem:[#allocation7 + $0x28] sm:$0xff]   ;;  %v2456_v44 = vld [vmem:[#allocation7 + $0x90] sm:$0xff]  }
 0x37e   :  { %v967_v49 = vsel %vm2751_vm10, %v959_v34, %v966_v37  ;;  %v976_v50 = vsel %vm2751_vm10, %v968_v40, %v975_v41  ;;  %993 = vst [vmem:[#allocation3] sm:$0xf] %v992_v48  ;;  %994 = vst [vmem:[#allocation3 + $0x4] sm:$0xf] %v958_v45  ;;  %v2452_v34 = vld [vmem:[#allocation7 + $0x30] sm:$0xff]   ;;  %v2453_v37 = vld [vmem:[#allocation7 + $0x38] sm:$0xff]  }
 0x37f   :  { %995 = vst [vmem:[#allocation3 + $0x8] sm:$0xf] %v967_v49  ;;  %996 = vst [vmem:[#allocation3 + $0xc] sm:$0xf] %v976_v50  ;;  %v985_v54 = vsel %vm2751_vm10, %v977_v46, %v984_v51  ;;  %v2454_v40 = vld [vmem:[#allocation7 + $0x80] sm:$0xff]   ;;  %v2455_v41 = vld [vmem:[#allocation7 + $0x88] sm:$0xff]  }
 0x380   :  { %v998_v4 = vsel %vm2778_vm14, %v985_v54, %v997_v52  ;;  %v2457_v45 = vld [vmem:[#allocation7 + $0x98] sm:$0xff]   ;;  %v2459_v46 = vld [vmem:[#allocation7 + $0xa0] sm:$0xff]   ;;  %v2460_v48 = vld [vmem:[#allocation7 + $0xa8] sm:$0xff]  }
 0x381   :  { %999 = vst [vmem:[#allocation3 + $0x10] sm:$0x3] %v998_v4  ;;  %v2461_v49 = vld [vmem:[#allocation7 + $0xb0] sm:$0xff]   ;;  %v2462_v50 = vld [vmem:[#allocation7 + $0xb8] sm:$0xff]  }
 0x385   :  { %v1000_v36 = vld [vmem:[#allocation3] sm:$0xf]  ;;  %v1001_v28 = vld [vmem:[#allocation3 + $0x4] sm:$0xf] }
 0x386   :  { %v1292_v22 = vld [vmem:[#allocation3] sm:$0xe]  ;;  %v1765_v21 = vcombine.low %v1000_v36, %v1001_v28  ;;  %v2444_v24 = vld [vmem:[#allocation3 + $0x8] sm:$0xff]  }
 0x387   :  { %v1785_v35 = vcombine.low %v1292_v22, %v1001_v28  ;;  %v1060_v43 = vshll.u32 %v2444_v24, 16  ;;  %v1314_v58 = vrot.slane %v2444_v24, 1  ;;  %v1064_v7 = vshrl.u32 %v2444_v24, 16 }
 0x388   :  { %v1055_v55 = vshll.u32 %v1765_v21, 16  ;;  %v1053_v59 = vshrl.u32 %v1765_v21, 16  ;;  %v3008_v61 = vld [vmem:[#allocation3 + $0x10] ss:$0 sps:$4 sm:$0x33]  }
 0x389   :  { %v1313_v57 = vrot.slane %v1785_v35, 1  ;;  %v1062_v62 = vrot.slane %v1060_v43, 1  ;;  %v1316_v1 = vrot.slane %v3008_v61, 1  ;;  %v1068_v3 = vshll.u32 %v3008_v61, 16 }
 0x38a   :  { %v1057_v60 = vrot.slane %v1055_v55, 1  ;;  %v1072_v25 = vshrl.u32 %v3008_v61, 16  ;;  %v2458_v47 = vld [vmem:[#allocation3 + $0x10] ss:$0 sps:$4 sm:$0x11]  }
 0x38b   :  { %v3011_v29 = vsel %vm509_vm1, %v1313_v57, %v1314_v58  ;;  %v3019_v5 = vsel %vm509_vm1, %v1314_v58, %v1316_v1  ;;  %v1066_v10 = vor.u32 %v1064_v7, %v1062_v62  ;;  %v1070_v11 = vrot.slane %v1068_v3, 1 }
 0x38c   :  { %v1058_v56 = vor.u32 %v1057_v60, %v1053_v59 }
 0x38d   :  { %v1071_v15 = vsel %vm247_vm15, %v1066_v10, %v1070_v11  ;;  %v1074_v31 = vor.u32 %v1072_v25, %v1070_v11 }
 0x38e   :  { %v1063_v2 = vsel %vm247_vm15, %v1058_v56, %v1062_v62 }
 0x38f   :  { %2109 = vmatmul.mubr.bf16.vlgmr.msra.gmra.mrb[4].mxu1 %v1063_v2 }
 0x390   :  { %2121 = vmatpush3.bf16.msra.mxu1 %v2445_v63  ;;  %2112 = vmatprep.mubr.msk.bf16.mxu1 %vm2595_vm0, %v2594_v0 }
 0x391   :  { %2122 = vmatprep.subr.bf16.mxu1 %v2594_v0 }
 0x394   :  { %2123 = vmatpush3.bf16.msra.mxu1 %v2446_v6 }
 0x395   :  { %2124 = vmatprep.subr.bf16.mxu1 %v2594_v0 }
 0x397   :  { %2113 = vmatmul.mubr.bf16.gmra.mrb[8].mxu1 %v1071_v15 }
 0x398   :  { %2125 = vmatpush3.bf16.msra.mxu1 %v2448_v13  ;;  %2116 = vmatprep.mubr.msk.bf16.mxu1 %vm2595_vm0, %v2594_v0 }
 0x399   :  { %2126 = vmatprep.subr.bf16.mxu1 %v2594_v0 }
 0x39c   :  { %2127 = vmatpush3.bf16.msra.mxu1 %v2449_v17 }
 0x39d   :  { %2128 = vmatprep.subr.bf16.mxu1 %v2594_v0 }
 0x39f   :  { %2117 = vmatmul.mubr.bf16.gmra.mrb[12].mxu1 %v1074_v31 }
 0x3a0   :  { %2129 = vmatpush3.bf16.msra.mxu1 %v2450_v27  ;;  %2136 = vmatprep.mubr.msk.bf16.mxu1 %vm2595_vm0, %v2594_v0 }
 0x3a1   :  { %2130 = vmatprep.subr.bf16.mxu1 %v2594_v0 }
 0x3a4   :  { %2131 = vmatpush3.bf16.msra.mxu1 %v2451_v32 }
 0x3a5   :  { %2132 = vmatprep.subr.bf16.mxu1 %v2594_v0 }
 0x3a8   :  { %2133 = vmatpush3.bf16.msra.mxu1 %v2452_v34 }
 0x3a9   :  { %2134 = vmatprep.subr.bf16.mxu1 %v2594_v0 }
 0x3ac   :  { %2135 = vmatpush3.bf16.msra.mxu1 %v2453_v37 }
 0x3ad   :  { %2148 = vmatprep.subr.bf16.mxu1 %v2594_v0 }
 0x3af   :  { %2137 = vmatmul.mubr.bf16.vlgmr.msra.gmra.mrb[4].mxu1 %v1765_v21 }
 0x3b0   :  { %2149 = vmatpush3.bf16.msra.mxu1 %v2454_v40  ;;  %2140 = vmatprep.mubr.msk.bf16.mxu1 %vm2595_vm0, %v2594_v0 }
 0x3b1   :  { %2150 = vmatprep.subr.bf16.mxu1 %v2594_v0 }
 0x3b4   :  { %2151 = vmatpush3.bf16.msra.mxu1 %v2455_v41 }
 0x3b5   :  { %2152 = vmatprep.subr.bf16.mxu1 %v2594_v0 }
 0x3b7   :  { %2141 = vmatmul.mubr.bf16.gmra.mrb[8].mxu1 %v2444_v24 }
 0x3b8   :  { %2153 = vmatpush3.bf16.msra.mxu1 %v2456_v44  ;;  %2144 = vmatprep.mubr.msk.bf16.mxu1 %vm2595_vm0, %v2594_v0 }
 0x3b9   :  { %2154 = vmatprep.subr.bf16.mxu1 %v2594_v0 }
 0x3bc   :  { %2155 = vmatpush3.bf16.msra.mxu1 %v2457_v45 }
 0x3bd   :  { %2156 = vmatprep.subr.bf16.mxu1 %v2594_v0 }
 0x3bf   :  { %2145 = vmatmul.mubr.bf16.gmra.mrb[12].mxu1 %v2458_v47 }
 0x3c0   :  { %2157 = vmatpush3.bf16.msra.mxu1 %v2459_v46  ;;  %2164 = vmatprep.mubr.msk.bf16.mxu1 %vm2595_vm0, %v2594_v0 }
 0x3c1   :  { %2158 = vmatprep.subr.bf16.mxu1 %v2594_v0 }
 0x3c4   :  { %2159 = vmatpush3.bf16.msra.mxu1 %v2460_v48 }
 0x3c5   :  { %2160 = vmatprep.subr.bf16.mxu1 %v2594_v0 }
 0x3c8   :  { %2161 = vmatpush3.bf16.msra.mxu1 %v2461_v49  ;;  %v1662_v49 = vld [vmem:[%s3160_s7] sm:$0x1] }
 0x3c9   :  { %2162 = vmatprep.subr.bf16.mxu1 %v2594_v0 }
 0x3cc   :  { %2163 = vmatpush3.bf16.msra.mxu1 %v2462_v50 }
 0x3cf   :  { %2165 = vmatmul.mubr.bf16.vlgmr.msra.gmra.mrb[4].mxu1 %v3011_v29 }
 0x3d0   :  { %2168 = vmatprep.mubr.msk.bf16.mxu1 %vm2595_vm0, %v2594_v0 }
 0x3d7   :  { %2169 = vmatmul.mubr.bf16.gmra.mrb[8].mxu1 %v3019_v5 }
 0x3d8   :  { %2172 = vmatprep.mubr.msk.bf16.mxu1 %vm2595_vm0, %v2594_v0 }
 0x3df   :  { %2173 = vmatmul.mubr.bf16.gmra.mrb[12].mxu1 %v1316_v1 }
 0x4a2   :  { %v1403_v51 = vpop.f32.mrb[4].mxu1 }
 0x4a3   :  { %v2166_v52 = vpop.f32.mrb[5].mxu1  ;;  %v3062_v28 = vmul.f32 %v1403_v51, %v2881_v14 }
 0x4a4   :  { %v1406_v54 = vpop.f32.mrb[6].mxu1 }
 0x4a5   :  { %v2167_v4 = vpop.f32.mrb[7].mxu1  ;;  %v3059_v36 = vmul.f32 %v1406_v54, %v2883_v18  ;;  %v1446_v57 = vmul.f32 %v3062_v28, %v3062_v28 }
 0x4a7   :  { %v1447_v35 = vmul.f32 %v3059_v36, %v3059_v36  ;;  %v1435_v18 = vadd.f32 %v3059_v36, %v3062_v28 }
 0x4aa   :  { %v1411_v22 = vpop.f32.mrb[8].mxu1 }
 0x4ab   :  { %v3065_v21 = vmul.f32 %v1411_v22, %v2885_v20  ;;  %v2170_v24 = vpop.f32.mrb[9].mxu1  ;;  %v1451_v20 = vadd.f32 %v1447_v35, %v1446_v57 }
 0x4ac   :  { %v1414_v55 = vpop.f32.mrb[10].mxu1 }
 0x4ad   :  { %v2171_v43 = vpop.f32.mrb[11].mxu1  ;;  %v1448_v14 = vmul.f32 %v3065_v21, %v3065_v21  ;;  %v3076_v58 = vmul.f32 %v1414_v55, %v2896_v26  ;;  %v1436_v59 = vadd.f32 %v1435_v18, %v3065_v21 }
 0x4ae   :  { %v1688_v43 = vld [vmem:[%s3153_s0 + $0x8] sm:$0xff] }
 0x4af   :  { %v1452_v60 = vadd.f32 %v1451_v20, %v1448_v14  ;;  %v1449_v61 = vmul.f32 %v3076_v58, %v3076_v58  ;;  %v1437_v63 = vadd.f32 %v1436_v59, %v3076_v58  ;;  %v1691_v14 = vld [vmem:[%s3153_s0 + $0x20] sm:$0x3] }
 0x4b1   :  { %v1453_v5 = vadd.f32 %v1452_v60, %v1449_v61 }
 0x4b2   :  { %v1419_v29 = vpop.f32.mrb[12].mxu1 }
 0x4b3   :  { %v3082_v56 = vmul.f32 %v1419_v29, %v2910_v39  ;;  %v2174_v62 = vpop.f32.mrb[13].mxu1 }
 0x4b4   :  { %v1422_v1 = vpop.f32.mrb[14].mxu1 }
 0x4b5   :  { %v1438_v2 = vsel %vm189_vm12, %v3082_v56, 0.0  ;;  %v1450_v26 = vmul.f32 %v3082_v56, %v3082_v56  ;;  %v2175_v3 = vpop.f32.mrb[15].mxu1 }
 0x4b6   :  { %v1439_v6 = vadd.f32 %v1438_v2, %v1437_v63 }
 0x4b7   :  { %v1454_v7 = vsel %vm189_vm12, %v1450_v26, 0.0 }
 0x4b8   :  { %v1440_v10 = vrot.slane %v1439_v6, 4  ;;  %v1455_v11 = vadd.f32 %v1454_v7, %v1453_v5 }
 0x4ba   :  { %v1441_v13 = vadd.f32 %v1440_v10, %v1439_v6  ;;  %v1456_v39 = vrot.slane %v1455_v11, 4 }
 0x4bc   :  { %v1442_v15 = vrot.slane %v1441_v13, 2  ;;  %v1457_v17 = vadd.f32 %v1456_v39, %v1455_v11 }
 0x4be   :  { %v1443_v25 = vadd.f32 %v1442_v15, %v1441_v13  ;;  %v1458_v27 = vrot.slane %v1457_v17, 2 }
 0x4c0   :  { %v1444_v31 = vrot.slane %v1443_v25, 1  ;;  %v1459_v32 = vadd.f32 %v1458_v27, %v1457_v17 }
 0x4c2   :  { %v1460_v34 = vrot.slane %v1459_v32, 1  ;;  %v1445_v37 = vadd.f32 %v1444_v31, %v1443_v25 }
 0x4c4   :  { %v1461_v40 = vadd.f32 %v1460_v34, %v1459_v32 }
 0x4c6   :  { %v1462_v41 = vsel %vm97_vm2, %v1445_v37, %v1461_v40 }
 0x4c7   :  { %2209 = vmatmul.mubr.f32.vlgmr.msra.gmra.mrb[12].mxu0 %v1462_v41 }
 0x4c8   :  { %2320 = vmatpush3.bf16.msra.mxu0 %v2923_v8  ;;  %2243 = vmatprep.mubr.msk.f32.mxu0 %vm2595_vm0, %v2594_v0 }
 0x4c9   :  { %2321 = vmatprep.subr.bf16.mxu0 %v2597_v53 }
 0x4cc   :  { %2323 = vmatpush3.bf16.msra.mxu0 %v2927_v12 }
 0x4cd   :  { %2324 = vmatprep.subr.bf16.mxu0 %v2597_v53 }
 0x4d0   :  { %2326 = vmatpush3.bf16.msra.mxu0 %v2933_v16 }
 0x4d1   :  { %2327 = vmatprep.subr.bf16.mxu0 %v2597_v53 }
 0x4d4   :  { %2329 = vmatpush3.bf16.msra.mxu0 %v2937_v23 }
 0x4d5   :  { %2330 = vmatprep.subr.bf16.mxu0 %v2597_v53 }
 0x4d8   :  { %2332 = vmatpush3.bf16.msra.mxu0 %v2941_v30 }
 0x4d9   :  { %2333 = vmatprep.subr.bf16.mxu0 %v2597_v53 }
 0x4dc   :  { %2335 = vmatpush3.bf16.msra.mxu0 %v2945_v33 }
 0x4dd   :  { %2336 = vmatprep.subr.bf16.mxu0 %v2597_v53 }
 0x4e0   :  { %2338 = vmatpush3.bf16.msra.mxu0 %v2949_v38 }
 0x4e1   :  { %2339 = vmatprep.subr.bf16.mxu0 %v2597_v53  ;;  %v1641_v53 = vld [vmem:[%s3159_s6] sm:$0x1] }
 0x4e4   :  { %2341 = vmatpush3.bf16.msra.mxu0 %v2953_v42 }
 0x59a   :  { %v1545_v0 = vpop.f32.mrb[12].mxu0 }
 0x59b   :  { %v2210_v8 = vpop.f32.mrb[13].mxu0  ;;  %2244 = vmatmul.mubr.f32.vlgmr.msra.gmra.mrb[14].mxu0 %v1545_v0 }
 0x66e   :  { %v1631_v12 = vpop.f32.mrb[14].mxu0 }
 0x66f   :  { %v1635_v16 = vmul.f32 %v1631_v12, %v1631_v12  ;;  %v2245_v23 = vpop.f32.mrb[15].mxu0 }
 0x671   :  { %v1637_v44 = vrot.slane %v1635_v16, 7 }
 0x673   :  { %v1639_v30 = vsub.f32 %v1631_v12, %v1637_v44 }
 0x675   :  { %v1640_v45 = vmax.f32 %v1639_v30, 0.0 }
 0x677   :  { %v1642_v46 = vadd.f32 1e-05, %v1640_v45 }
 0x679   :  { %2466 = vrsqrt.f32 %v1642_v46 }
 0x683   :  { %v2467_v33 = vpop.eup %2466 }
 0x684   :  { %v1651_v47 = vrot.slane %v2467_v33, %v2972_v9 }
 0x686   :  { %v1652_v48 = vcombine.high %v1651_v47, %v1651_v47 }
 0x688   :  { %v1659_v38 = vrot.slane %v1652_v48, %v2972_v9  ;;  %v1687_v9 = vld [vmem:[%s3153_s0] sm:$0xff] }
 0x68a   :  { %v1661_v42 = vmul.f32 %v1659_v38, %v1641_v53 }
 0x68c   :  { %v1663_v50 = vmul.f32 %v1661_v42, %v1631_v12  ;;  %v1669_v51 = vrot.slane %v1661_v42, %v2979_v19 }
 0x68e   :  { %v1664_v52 = vsub.f32 %v1662_v49, %v1663_v50  ;;  %v1671_v54 = vmul.f32 %v1669_v51, %v3062_v28  ;;  %v1672_v22 = vmul.f32 %v1669_v51, %v3059_v36  ;;  %v1673_v24 = vmul.f32 %v1669_v51, %v3065_v21  ;;  %v1690_v36 = vld [vmem:[%s3153_s0 + $0x18] sm:$0xff] }
 0x68f   :  { %v1674_v35 = vmul.f32 %v1669_v51, %v3076_v58  ;;  %v1675_v55 = vmul.f32 %v1669_v51, %v3082_v56 }
 0x690   :  { %v1680_v4 = vrot.slane %v1664_v52, %v2979_v19  ;;  %v1689_v19 = vld [vmem:[%s3153_s0 + $0x10] sm:$0xff]  ;;  %s2556_s0 = scalar_lea.vmem %s1713_s13, 640 }
 0x691   :  { %p2557_p4 = scmp.ne.s32.totalorder %s1713_s13, %s2556_s0  ;;  %p2562_p6 = scmp.lt.s32.totalorder %s2556_s0, %s2556_s0 }
 0x692   :  { %v1682_v28 = vadd.f32 %v1680_v4, %v1671_v54  ;;  %v1683_v21 = vadd.f32 %v1680_v4, %v1672_v22  ;;  %v1684_v57 = vadd.f32 %v1680_v4, %v1673_v24  ;;  %v1685_v18 = vadd.f32 %v1680_v4, %v1674_v35 }
 0x693   :  { %v1686_v58 = vadd.f32 %v1680_v4, %v1675_v55  ;;  %p2563_p7 = por %p2562_p6, %p2561_p5 }
 0x694   :  { %v1692_v20 = vadd.f32 %v1687_v9, %v1682_v28  ;;  %v1693_v59 = vadd.f32 %v1688_v43, %v1683_v21  ;;  %v1694_v60 = vadd.f32 %v1689_v19, %v1684_v57  ;;  %v1695_v61 = vadd.f32 %v1690_v36, %v1685_v18 }
 0x695   :  { %v1696_v29 = vadd.f32 %v1691_v14, %v1686_v58  ;;  %p2564_p8 = pnand %p2563_p7, %p2557_p4 }
 0x696   :  { %v1697_v56 = vmax.f32 %v1692_v20, 0.0  ;;  %v1698_v62 = vmax.f32 %v1693_v59, 0.0  ;;  %v1699_v63 = vmax.f32 %v1694_v60, 0.0  ;;  %v1700_v1 = vmax.f32 %v1695_v61, 0.0 }
 0x697   :  { %v1701_v2 = vmax.f32 %v1696_v29, 0.0 }
 0x698   :  { %1702 = vst [vmem:[#allocation12] sm:$0xff] %v1697_v56  ;;  %1703 = vst [vmem:[#allocation12 + $0x8] sm:$0xff] %v1698_v62 }
 0x699   :  { %1704 = vst [vmem:[#allocation12 + $0x10] sm:$0xff] %v1699_v63  ;;  %1705 = vst [vmem:[#allocation12 + $0x18] sm:$0xff] %v1700_v1 }
 0x69a   :  { %1706 = vst [vmem:[#allocation12 + $0x20] sm:$0x3] %v1701_v2 }
 0x69b   :  { %2567 = shalt.err (!%p2564_p8)
}
 0x69c   :  { %s2568_s18 = scalar_lea.hbm %s3163_s10, 640 }
 0x69d   :  { %p2569_p9 = scmp.ne.s32.totalorder %s3163_s10, %s2568_s18  ;;  %p2572_p10 = scmp.lt.u32.totalorder %s2568_s18, %s3163_s10 }
 0x69f   :  { %p2574_p11 = pnand %p2572_p10, %p2569_p9 }
 0x6a1   :  { %2577 = shalt.err (!%p2574_p11)
}
 0x6a2   :  { %1718 = dma.vmem_to_hbm [thread:$0]  %s1713_s13, 640, %s3163_s10, [#allocation6], %s2591_s2, %s2591_s2, %s2592_s16  }
 0x6a3   :  { %2584 = dma.done.wait [#allocation6], 640  }
 0x6a4   :  { %2585 = vsyncadd [#allocation6], 4294966656 }
 0x6a5   :  { %1722 = vsyncpa [#allocation5], 1 }
 0x6a6   :  { %1723 = vsyncpa [#allocation8], 1 }
 0x6a7   :  { %1724 = vsyncpa [#allocation11], 1 }
 0x6a8   :  { %1725 = vsyncpa [#allocation6], 1 }

</bundles_post_ra>
